<compile_context>
chip_gen: v6e
topology: v6e:2x2x1
jax: 0.10.0
libtpu: 0.0.40
codegen_flags: <defaults>
</compile_context>

<pallas_src>
import functools
import math

import jax
import jax.numpy as jnp
import numpy as np
from jax import lax
from jax.experimental import pallas as pl
from jax.experimental.pallas import tpu as pltpu


# ----------------------------- fused LUNA kernel -----------------------------
def _luna_kernel(q_ref, k_ref, v_ref, p_ref, imask_ref, pmask_ref,
                 wpq_ref, bpq_ref, wpk_ref, bpk_ref, wpv_ref, bpv_ref,
                 wuq_ref, buq_ref, wukv_ref, bukv_ref, wo_ref, bo_ref,
                 yp_ref, yx_ref, *, num_heads, d_head):
    """One batch element per grid step; all heads processed in this step."""
    scale = d_head ** -0.5
    d_model = num_heads * d_head
    # contract last dim of both operands (q @ k^T without materializing k^T)
    CONTRACT_LAST = (((1,), (1,)), ((), ()))

    query = q_ref[0]      # (Lq, d)
    key   = k_ref[0]      # (Lk, d)
    value = v_ref[0]      # (Lk, d)
    pbuf  = p_ref[0]      # (P,  d)
    imask = imask_ref[0]  # (1, Lk)  1.0 where masked
    pmask = pmask_ref[0]  # (1, P)   1.0 where masked

    def mha(q2d, k2d, v2d, mask):
        # q2d: (Lq, d), k2d/v2d: (Lk, d), mask: (1, Lk).
        # Heads live in contiguous lane slices of the projection output, exactly
        # matching torch's .view(B, L, H, Dh).transpose(1, 2) head layout.
        ctx_heads = []
        for h in range(num_heads):           # static unroll, H is tiny
            sl = slice(h * d_head, (h + 1) * d_head)
            qh = q2d[:, sl] * scale           # (Lq, Dh)
            kh = k2d[:, sl]                   # (Lk, Dh)
            vh = v2d[:, sl]                   # (Lk, Dh)
            s = lax.dot_general(qh, kh, CONTRACT_LAST,
                                preferred_element_type=jnp.float32)   # (Lq, Lk)
            s = jnp.where(mask > 0.5, -10000.0, s)   # masked_fill_(mask, -10000)
            m = jnp.max(s, axis=-1, keepdims=True)
            e = jnp.exp(s - m)
            inv = pl.reciprocal(jnp.sum(e, axis=-1, keepdims=True), approx=True)
            probs = e * inv
            ctx_heads.append(jnp.dot(probs, vh, preferred_element_type=jnp.float32))
        # merged-head, lane-dense (Lq, d_model) output
        return jnp.concatenate(ctx_heads, axis=-1)

    # ---- pack attention: query = p, key/value = key/value, mask = input_mask ----
    pq = jnp.dot(pbuf, wpq_ref[...], preferred_element_type=jnp.float32) + bpq_ref[...]
    pk = jnp.dot(key, wpk_ref[...], preferred_element_type=jnp.float32) + bpk_ref[...]
    pv = jnp.dot(value, wpv_ref[...], preferred_element_type=jnp.float32) + bpv_ref[...]
    yp = mha(pq, pk, pv, imask)                                   # (P, d)
    yp_ref[0] = yp

    # ---- unpack attention: query = query, key = value = Yp, mask = p_mask ----
    uq = jnp.dot(query, wuq_ref[...], preferred_element_type=jnp.float32) + buq_ref[...]
    ukv = jnp.dot(yp, wukv_ref[...], preferred_element_type=jnp.float32) + bukv_ref[...]
    uk = ukv[:, :d_model]
    uv = ukv[:, d_model:]
    yx = mha(uq, uk, uv, pmask)                                   # (Lq, d)

    # ---- final output Linear of the LUNA module ----
    yx_ref[0] = jnp.dot(yx, wo_ref[...], preferred_element_type=jnp.float32) + bo_ref[...]


def luna_attention_forward(params, query, key, value, p,
                           input_mask=None, p_mask=None, *, num_heads):
    """LinearUnifiedNestedAttention.forward -> (Yp, Yx)."""
    B, Lq, d = query.shape
    Lk = key.shape[1]
    P = p.shape[1]
    d_head = d // num_heads

    if input_mask is None:
        input_mask = jnp.zeros((B, Lk), jnp.bool_)
    if p_mask is None:
        p_mask = jnp.zeros((B, P), jnp.bool_)
    imask = input_mask.reshape(B, 1, Lk).astype(jnp.float32)
    pmask = p_mask.reshape(B, 1, P).astype(jnp.float32)

    batched = lambda shape: pl.BlockSpec(shape, lambda i: (i, 0, 0))
    full2d = lambda shape: pl.BlockSpec(shape, lambda i: (0, 0))

    kernel = functools.partial(_luna_kernel, num_heads=num_heads, d_head=d_head)
    yp, yx = pl.pallas_call(
        kernel,
        grid=(B,),
        out_shape=(jax.ShapeDtypeStruct((B, P, d), jnp.float32),
                   jax.ShapeDtypeStruct((B, Lq, d), jnp.float32)),
        in_specs=[
            batched((1, Lq, d)),        # query
            batched((1, Lk, d)),        # key
            batched((1, Lk, d)),        # value
            batched((1, P, d)),         # p
            batched((1, 1, Lk)),        # input_mask
            batched((1, 1, P)),         # p_mask
            full2d((d, d)), full2d((1, d)),          # pack query_proj
            full2d((d, d)), full2d((1, d)),          # pack key_proj
            full2d((d, d)), full2d((1, d)),          # pack value_proj
            full2d((d, d)), full2d((1, d)),          # unpack query_proj
            full2d((d, 2 * d)), full2d((1, 2 * d)),  # unpack key|value proj (packed)
            full2d((d, d)), full2d((1, d)),          # final linear
        ],
        out_specs=(batched((1, P, d)), batched((1, Lq, d))),
        compiler_params=pltpu.CompilerParams(dimension_semantics=("parallel",)),
    )(query, key, value, p, imask, pmask,
      params["pack_q_w"], params["pack_q_b"],
      params["pack_k_w"], params["pack_k_b"],
      params["pack_v_w"], params["pack_v_b"],
      params["unpack_q_w"], params["unpack_q_b"],
      params["unpack_kv_w"], params["unpack_kv_b"],
      params["out_w"], params["out_b"])
    return yp, yx


# ----------------------------- parameters ------------------------------------
def init_luna_params(key, d_model):
    """torch nn.Linear default init: U(-1/sqrt(fan_in), 1/sqrt(fan_in)); W stored as (in, out)."""
    def lin(k, d_in, d_out):
        k1, k2 = jax.random.split(k)
        bound = 1.0 / math.sqrt(d_in)
        w = jax.random.uniform(k1, (d_in, d_out), jnp.float32, -bound, bound)
        b = jax.random.uniform(k2, (1, d_out), jnp.float32, -bound, bound)
        return w, b

    ks = jax.random.split(key, 7)
    prm = {}
    prm["pack_q_w"], prm["pack_q_b"] = lin(ks[0], d_model, d_model)
    prm["pack_k_w"], prm["pack_k_b"] = lin(ks[1], d_model, d_model)
    prm["pack_v_w"], prm["pack_v_b"] = lin(ks[2], d_model, d_model)
    prm["unpack_q_w"], prm["unpack_q_b"] = lin(ks[3], d_model, d_model)
    uk_w, uk_b = lin(ks[4], d_model, d_model)
    uv_w, uv_b = lin(ks[5], d_model, d_model)
    prm["unpack_kv_w"] = jnp.concatenate([uk_w, uv_w], axis=1)   # (d, 2d) packed K|V
    prm["unpack_kv_b"] = jnp.concatenate([uk_b, uv_b], axis=1)   # (1, 2d)
    prm["out_w"], prm["out_b"] = lin(ks[6], d_model, d_model)
    return prm


# ----------------------------- pure-JAX reference ----------------------------
def reference_luna(params, query, key, value, p, input_mask, p_mask, num_heads):
    d = query.shape[-1]
    dh = d // num_heads
    scale = dh ** -0.5

    def split(x):
        B, L, _ = x.shape
        return x.reshape(B, L, num_heads, dh).transpose(0, 2, 1, 3)

    def merge(x):
        B, H, L, Dh = x.shape
        return x.transpose(0, 2, 1, 3).reshape(B, L, H * Dh)

    def mha(q, k, v, wq, bq, wk, bk, wv, bv, mask):
        qh = split(q @ wq + bq) * scale
        kh = split(k @ wk + bk)
        vh = split(v @ wv + bv)
        s = jnp.einsum("bhqd,bhkd->bhqk", qh, kh)
        s = jnp.where(mask[:, None, None, :], -10000.0, s)
        pr = jax.nn.softmax(s, axis=-1)
        return merge(jnp.einsum("bhqk,bhkd->bhqd", pr, vh))

    yp = mha(p, key, value,
             params["pack_q_w"], params["pack_q_b"],
             params["pack_k_w"], params["pack_k_b"],
             params["pack_v_w"], params["pack_v_b"], input_mask)
    uk_w, uv_w = params["unpack_kv_w"][:, :d], params["unpack_kv_w"][:, d:]
    uk_b, uv_b = params["unpack_kv_b"][:, :d], params["unpack_kv_b"][:, d:]
    yx = mha(query, yp, yp,
             params["unpack_q_w"], params["unpack_q_b"],
             uk_w, uk_b, uv_w, uv_b, p_mask)
    yx = yx @ params["out_w"] + params["out_b"]
    return yp, yx


# ----------------------------- main -------------------------------------------
if __name__ == "__main__":
    B, L, P, D, H = 2, 16, 8, 32, 4

    root = jax.random.PRNGKey(0)
    kp, kq, kk, kv, kpr = jax.random.split(root, 5)
    params = init_luna_params(kp, D)

    query = jax.random.normal(kq, (B, L, D), jnp.float32)
    key = jax.random.normal(kk, (B, L, D), jnp.float32)
    value = jax.random.normal(kv, (B, L, D), jnp.float32)
    proj = jax.random.normal(kpr, (B, P, D), jnp.float32)

    # padding masks (True == masked), exercising both mask paths
    lengths = jnp.array([12, 5], jnp.int32)
    input_mask = jnp.arange(L)[None, :] >= lengths[:, None]      # (B, L)
    p_mask = jnp.arange(P)[None, :] >= lengths[:, None]          # (B, P)

    fwd = jax.jit(functools.partial(luna_attention_forward, num_heads=H))
    yp, yx = jax.block_until_ready(fwd(params, query, key, value, proj, input_mask, p_mask))

    assert yp.shape == (B, P, D) and yx.shape == (B, L, D)
    assert bool(jnp.all(jnp.isfinite(yp))) and bool(jnp.all(jnp.isfinite(yx)))

    yp_ref, yx_ref = reference_luna(params, query, key, value, proj, input_mask, p_mask, H)
    np.testing.assert_allclose(np.asarray(yp), np.asarray(yp_ref), rtol=2e-2, atol=2e-2)
    np.testing.assert_allclose(np.asarray(yx), np.asarray(yx_ref), rtol=2e-2, atol=2e-2)

    print("KERNEL_OK")
</pallas_src>

<mosaic_0001>
module attributes {stable_mosaic.version = 11 : i64} {
  func.func @_luna_kernel(%arg0: i32, %arg1: memref<1x16x32xf32, #tpu.memory_space<vmem>>, %arg2: memref<1x16x32xf32, #tpu.memory_space<vmem>>, %arg3: memref<1x16x32xf32, #tpu.memory_space<vmem>>, %arg4: memref<1x8x32xf32, #tpu.memory_space<vmem>>, %arg5: memref<1x1x16xf32, #tpu.memory_space<vmem>>, %arg6: memref<1x1x8xf32, #tpu.memory_space<vmem>>, %arg7: memref<32x32xf32, #tpu.memory_space<vmem>>, %arg8: memref<1x32xf32, #tpu.memory_space<vmem>>, %arg9: memref<32x32xf32, #tpu.memory_space<vmem>>, %arg10: memref<1x32xf32, #tpu.memory_space<vmem>>, %arg11: memref<32x32xf32, #tpu.memory_space<vmem>>, %arg12: memref<1x32xf32, #tpu.memory_space<vmem>>, %arg13: memref<32x32xf32, #tpu.memory_space<vmem>>, %arg14: memref<1x32xf32, #tpu.memory_space<vmem>>, %arg15: memref<32x64xf32, #tpu.memory_space<vmem>>, %arg16: memref<1x64xf32, #tpu.memory_space<vmem>>, %arg17: memref<32x32xf32, #tpu.memory_space<vmem>>, %arg18: memref<1x32xf32, #tpu.memory_space<vmem>>, %arg19: memref<1x8x32xf32, #tpu.memory_space<vmem>>, %arg20: memref<1x16x32xf32, #tpu.memory_space<vmem>>) attributes {dimension_semantics = [#tpu.dimension_semantics<parallel>], iteration_bounds = array<i64: 2>, scalar_prefetch = 0 : i64, scratch_operands = 0 : i64, tpu.core_type = #tpu.core_type<tc>, window_params = [{transform_indices = @transform_0, window_bounds = array<i64: 1, 16, 32>}, {transform_indices = @transform_1, window_bounds = array<i64: 1, 16, 32>}, {transform_indices = @transform_2, window_bounds = array<i64: 1, 16, 32>}, {transform_indices = @transform_3, window_bounds = array<i64: 1, 8, 32>}, {transform_indices = @transform_4, window_bounds = array<i64: 1, 1, 16>}, {transform_indices = @transform_5, window_bounds = array<i64: 1, 1, 8>}, {pipeline_mode = #tpu.pipeline_mode<synchronous>, transform_indices = @transform_6, window_bounds = array<i64: 32, 32>}, {pipeline_mode = #tpu.pipeline_mode<synchronous>, transform_indices = @transform_7, window_bounds = array<i64: 1, 32>}, {pipeline_mode = #tpu.pipeline_mode<synchronous>, transform_indices = @transform_8, window_bounds = array<i64: 32, 32>}, {pipeline_mode = #tpu.pipeline_mode<synchronous>, transform_indices = @transform_9, window_bounds = array<i64: 1, 32>}, {pipeline_mode = #tpu.pipeline_mode<synchronous>, transform_indices = @transform_10, window_bounds = array<i64: 32, 32>}, {pipeline_mode = #tpu.pipeline_mode<synchronous>, transform_indices = @transform_11, window_bounds = array<i64: 1, 32>}, {pipeline_mode = #tpu.pipeline_mode<synchronous>, transform_indices = @transform_12, window_bounds = array<i64: 32, 32>}, {pipeline_mode = #tpu.pipeline_mode<synchronous>, transform_indices = @transform_13, window_bounds = array<i64: 1, 32>}, {pipeline_mode = #tpu.pipeline_mode<synchronous>, transform_indices = @transform_14, window_bounds = array<i64: 32, 64>}, {pipeline_mode = #tpu.pipeline_mode<synchronous>, transform_indices = @transform_15, window_bounds = array<i64: 1, 64>}, {pipeline_mode = #tpu.pipeline_mode<synchronous>, transform_indices = @transform_16, window_bounds = array<i64: 32, 32>}, {pipeline_mode = #tpu.pipeline_mode<synchronous>, transform_indices = @transform_17, window_bounds = array<i64: 1, 32>}, {transform_indices = @transform_18, window_bounds = array<i64: 1, 8, 32>}, {transform_indices = @transform_19, window_bounds = array<i64: 1, 16, 32>}]} {
    %c0 = arith.constant 0 : index
    %c0_0 = arith.constant 0 : index
    %c0_1 = arith.constant 0 : index
    %0 = vector.load %arg1[%c0, %c0_0, %c0_1] : memref<1x16x32xf32, #tpu.memory_space<vmem>>, vector<1x16x32xf32>
    %1 = vector.shape_cast %0 : vector<1x16x32xf32> to vector<16x32xf32>
    %c0_2 = arith.constant 0 : index
    %c0_3 = arith.constant 0 : index
    %c0_4 = arith.constant 0 : index
    %2 = vector.load %arg2[%c0_2, %c0_3, %c0_4] : memref<1x16x32xf32, #tpu.memory_space<vmem>>, vector<1x16x32xf32>
    %3 = vector.shape_cast %2 : vector<1x16x32xf32> to vector<16x32xf32>
    %c0_5 = arith.constant 0 : index
    %c0_6 = arith.constant 0 : index
    %c0_7 = arith.constant 0 : index
    %4 = vector.load %arg3[%c0_5, %c0_6, %c0_7] : memref<1x16x32xf32, #tpu.memory_space<vmem>>, vector<1x16x32xf32>
    %5 = vector.shape_cast %4 : vector<1x16x32xf32> to vector<16x32xf32>
    %c0_8 = arith.constant 0 : index
    %c0_9 = arith.constant 0 : index
    %c0_10 = arith.constant 0 : index
    %6 = vector.load %arg4[%c0_8, %c0_9, %c0_10] : memref<1x8x32xf32, #tpu.memory_space<vmem>>, vector<1x8x32xf32>
    %7 = vector.shape_cast %6 : vector<1x8x32xf32> to vector<8x32xf32>
    %c0_11 = arith.constant 0 : index
    %c0_12 = arith.constant 0 : index
    %c0_13 = arith.constant 0 : index
    %8 = vector.load %arg5[%c0_11, %c0_12, %c0_13] : memref<1x1x16xf32, #tpu.memory_space<vmem>>, vector<1x1x16xf32>
    %9 = vector.shape_cast %8 : vector<1x1x16xf32> to vector<1x16xf32>
    %c0_14 = arith.constant 0 : index
    %c0_15 = arith.constant 0 : index
    %c0_16 = arith.constant 0 : index
    %10 = vector.load %arg6[%c0_14, %c0_15, %c0_16] : memref<1x1x8xf32, #tpu.memory_space<vmem>>, vector<1x1x8xf32>
    %11 = vector.shape_cast %10 : vector<1x1x8xf32> to vector<1x8xf32>
    %c0_17 = arith.constant 0 : index
    %c0_18 = arith.constant 0 : index
    %12 = vector.load %arg7[%c0_17, %c0_18] : memref<32x32xf32, #tpu.memory_space<vmem>>, vector<32x32xf32>
    %cst = arith.constant dense<0.000000e+00> : vector<8x32xf32>
    %13 = tpu.matmul %7, %12, %cst {dimension_numbers = #tpu.dot_dimension_numbers<[1], [0], [0], [1], [0, 0, 1, 1], [], []>} : vector<8x32xf32>, vector<32x32xf32>, vector<8x32xf32> -> vector<8x32xf32>
    %c0_19 = arith.constant 0 : index
    %c0_20 = arith.constant 0 : index
    %14 = vector.load %arg8[%c0_19, %c0_20] : memref<1x32xf32, #tpu.memory_space<vmem>>, vector<1x32xf32>
    %15 = vector.broadcast %14 : vector<1x32xf32> to vector<8x32xf32>
    %16 = arith.addf %13, %15 : vector<8x32xf32>
    %c0_21 = arith.constant 0 : index
    %c0_22 = arith.constant 0 : index
    %17 = vector.load %arg9[%c0_21, %c0_22] : memref<32x32xf32, #tpu.memory_space<vmem>>, vector<32x32xf32>
    %cst_23 = arith.constant dense<0.000000e+00> : vector<16x32xf32>
    %18 = tpu.matmul %3, %17, %cst_23 {dimension_numbers = #tpu.dot_dimension_numbers<[1], [0], [0], [1], [0, 0, 1, 1], [], []>} : vector<16x32xf32>, vector<32x32xf32>, vector<16x32xf32> -> vector<16x32xf32>
    %c0_24 = arith.constant 0 : index
    %c0_25 = arith.constant 0 : index
    %19 = vector.load %arg10[%c0_24, %c0_25] : memref<1x32xf32, #tpu.memory_space<vmem>>, vector<1x32xf32>
    %20 = vector.broadcast %19 : vector<1x32xf32> to vector<16x32xf32>
    %21 = arith.addf %18, %20 : vector<16x32xf32>
    %c0_26 = arith.constant 0 : index
    %c0_27 = arith.constant 0 : index
    %22 = vector.load %arg11[%c0_26, %c0_27] : memref<32x32xf32, #tpu.memory_space<vmem>>, vector<32x32xf32>
    %cst_28 = arith.constant dense<0.000000e+00> : vector<16x32xf32>
    %23 = tpu.matmul %5, %22, %cst_28 {dimension_numbers = #tpu.dot_dimension_numbers<[1], [0], [0], [1], [0, 0, 1, 1], [], []>} : vector<16x32xf32>, vector<32x32xf32>, vector<16x32xf32> -> vector<16x32xf32>
    %c0_29 = arith.constant 0 : index
    %c0_30 = arith.constant 0 : index
    %24 = vector.load %arg12[%c0_29, %c0_30] : memref<1x32xf32, #tpu.memory_space<vmem>>, vector<1x32xf32>
    %25 = vector.broadcast %24 : vector<1x32xf32> to vector<16x32xf32>
    %26 = arith.addf %23, %25 : vector<16x32xf32>
    %27 = vector.extract_strided_slice %16 {offsets = [0, 0], sizes = [8, 8], strides = [1, 1]} : vector<8x32xf32> to vector<8x8xf32>
    %cst_31 = arith.constant 0.353553385 : f32
    %28 = vector.broadcast %cst_31 : f32 to vector<8x8xf32>
    %29 = arith.mulf %27, %28 : vector<8x8xf32>
    %30 = vector.extract_strided_slice %21 {offsets = [0, 0], sizes = [16, 8], strides = [1, 1]} : vector<16x32xf32> to vector<16x8xf32>
    %31 = vector.extract_strided_slice %26 {offsets = [0, 0], sizes = [16, 8], strides = [1, 1]} : vector<16x32xf32> to vector<16x8xf32>
    %cst_32 = arith.constant dense<0.000000e+00> : vector<8x16xf32>
    %32 = tpu.matmul %29, %30, %cst_32 {dimension_numbers = #tpu.dot_dimension_numbers<[1], [1], [0], [0], [0, 0, 1, 0], [], []>} : vector<8x8xf32>, vector<16x8xf32>, vector<8x16xf32> -> vector<8x16xf32>
    %cst_33 = arith.constant 5.000000e-01 : f32
    %33 = vector.broadcast %cst_33 : f32 to vector<1x16xf32>
    %34 = arith.cmpf ogt, %9, %33 : vector<1x16xf32>
    %cst_34 = arith.constant -1.000000e+04 : f32
    %35 = vector.shape_cast %34 : vector<1x16xi1> to vector<1x16xi1>
    %36 = vector.broadcast %35 : vector<1x16xi1> to vector<8x16xi1>
    %37 = vector.broadcast %cst_34 : f32 to vector<8x16xf32>
    %38 = arith.select %36, %37, %32 : vector<8x16xi1>, vector<8x16xf32>
    %cst_35 = arith.constant dense<0xFF800000> : vector<8xf32>
    %39 = vector.multi_reduction <maximumf>, %38, %cst_35 [1] : vector<8x16xf32> to vector<8xf32>
    %40 = vector.shape_cast %39 : vector<8xf32> to vector<8x1xf32>
    %41 = vector.broadcast %40 : vector<8x1xf32> to vector<8x16xf32>
    %42 = arith.subf %38, %41 : vector<8x16xf32>
    %43 = math.exp %42 : vector<8x16xf32>
    %cst_36 = arith.constant dense<0.000000e+00> : vector<8xf32>
    %44 = vector.multi_reduction <add>, %43, %cst_36 [1] : vector<8x16xf32> to vector<8xf32>
    %45 = vector.shape_cast %44 : vector<8xf32> to vector<8x1xf32>
    %46 = tpu.reciprocal %45 {approx = true} : vector<8x1xf32> -> vector<8x1xf32>
    %47 = vector.broadcast %46 : vector<8x1xf32> to vector<8x16xf32>
    %48 = arith.mulf %43, %47 : vector<8x16xf32>
    %cst_37 = arith.constant dense<0.000000e+00> : vector<8x8xf32>
    %49 = tpu.matmul %48, %31, %cst_37 {dimension_numbers = #tpu.dot_dimension_numbers<[1], [0], [0], [1], [0, 0, 1, 1], [], []>} : vector<8x16xf32>, vector<16x8xf32>, vector<8x8xf32> -> vector<8x8xf32>
    %50 = vector.extract_strided_slice %16 {offsets = [0, 8], sizes = [8, 8], strides = [1, 1]} : vector<8x32xf32> to vector<8x8xf32>
    %cst_38 = arith.constant 0.353553385 : f32
    %51 = vector.broadcast %cst_38 : f32 to vector<8x8xf32>
    %52 = arith.mulf %50, %51 : vector<8x8xf32>
    %53 = vector.extract_strided_slice %21 {offsets = [0, 8], sizes = [16, 8], strides = [1, 1]} : vector<16x32xf32> to vector<16x8xf32>
    %54 = vector.extract_strided_slice %26 {offsets = [0, 8], sizes = [16, 8], strides = [1, 1]} : vector<16x32xf32> to vector<16x8xf32>
    %cst_39 = arith.constant dense<0.000000e+00> : vector<8x16xf32>
    %55 = tpu.matmul %52, %53, %cst_39 {dimension_numbers = #tpu.dot_dimension_numbers<[1], [1], [0], [0], [0, 0, 1, 0], [], []>} : vector<8x8xf32>, vector<16x8xf32>, vector<8x16xf32> -> vector<8x16xf32>
    %cst_40 = arith.constant 5.000000e-01 : f32
    %56 = vector.broadcast %cst_40 : f32 to vector<1x16xf32>
    %57 = arith.cmpf ogt, %9, %56 : vector<1x16xf32>
    %cst_41 = arith.constant -1.000000e+04 : f32
    %58 = vector.shape_cast %57 : vector<1x16xi1> to vector<1x16xi1>
    %59 = vector.broadcast %58 : vector<1x16xi1> to vector<8x16xi1>
    %60 = vector.broadcast %cst_41 : f32 to vector<8x16xf32>
    %61 = arith.select %59, %60, %55 : vector<8x16xi1>, vector<8x16xf32>
    %cst_42 = arith.constant dense<0xFF800000> : vector<8xf32>
    %62 = vector.multi_reduction <maximumf>, %61, %cst_42 [1] : vector<8x16xf32> to vector<8xf32>
    %63 = vector.shape_cast %62 : vector<8xf32> to vector<8x1xf32>
    %64 = vector.broadcast %63 : vector<8x1xf32> to vector<8x16xf32>
    %65 = arith.subf %61, %64 : vector<8x16xf32>
    %66 = math.exp %65 : vector<8x16xf32>
    %cst_43 = arith.constant dense<0.000000e+00> : vector<8xf32>
    %67 = vector.multi_reduction <add>, %66, %cst_43 [1] : vector<8x16xf32> to vector<8xf32>
    %68 = vector.shape_cast %67 : vector<8xf32> to vector<8x1xf32>
    %69 = tpu.reciprocal %68 {approx = true} : vector<8x1xf32> -> vector<8x1xf32>
    %70 = vector.broadcast %69 : vector<8x1xf32> to vector<8x16xf32>
    %71 = arith.mulf %66, %70 : vector<8x16xf32>
    %cst_44 = arith.constant dense<0.000000e+00> : vector<8x8xf32>
    %72 = tpu.matmul %71, %54, %cst_44 {dimension_numbers = #tpu.dot_dimension_numbers<[1], [0], [0], [1], [0, 0, 1, 1], [], []>} : vector<8x16xf32>, vector<16x8xf32>, vector<8x8xf32> -> vector<8x8xf32>
    %73 = vector.extract_strided_slice %16 {offsets = [0, 16], sizes = [8, 8], strides = [1, 1]} : vector<8x32xf32> to vector<8x8xf32>
    %cst_45 = arith.constant 0.353553385 : f32
    %74 = vector.broadcast %cst_45 : f32 to vector<8x8xf32>
    %75 = arith.mulf %73, %74 : vector<8x8xf32>
    %76 = vector.extract_strided_slice %21 {offsets = [0, 16], sizes = [16, 8], strides = [1, 1]} : vector<16x32xf32> to vector<16x8xf32>
    %77 = vector.extract_strided_slice %26 {offsets = [0, 16], sizes = [16, 8], strides = [1, 1]} : vector<16x32xf32> to vector<16x8xf32>
    %cst_46 = arith.constant dense<0.000000e+00> : vector<8x16xf32>
    %78 = tpu.matmul %75, %76, %cst_46 {dimension_numbers = #tpu.dot_dimension_numbers<[1], [1], [0], [0], [0, 0, 1, 0], [], []>} : vector<8x8xf32>, vector<16x8xf32>, vector<8x16xf32> -> vector<8x16xf32>
    %cst_47 = arith.constant 5.000000e-01 : f32
    %79 = vector.broadcast %cst_47 : f32 to vector<1x16xf32>
    %80 = arith.cmpf ogt, %9, %79 : vector<1x16xf32>
    %cst_48 = arith.constant -1.000000e+04 : f32
    %81 = vector.shape_cast %80 : vector<1x16xi1> to vector<1x16xi1>
    %82 = vector.broadcast %81 : vector<1x16xi1> to vector<8x16xi1>
    %83 = vector.broadcast %cst_48 : f32 to vector<8x16xf32>
    %84 = arith.select %82, %83, %78 : vector<8x16xi1>, vector<8x16xf32>
    %cst_49 = arith.constant dense<0xFF800000> : vector<8xf32>
    %85 = vector.multi_reduction <maximumf>, %84, %cst_49 [1] : vector<8x16xf32> to vector<8xf32>
    %86 = vector.shape_cast %85 : vector<8xf32> to vector<8x1xf32>
    %87 = vector.broadcast %86 : vector<8x1xf32> to vector<8x16xf32>
    %88 = arith.subf %84, %87 : vector<8x16xf32>
    %89 = math.exp %88 : vector<8x16xf32>
    %cst_50 = arith.constant dense<0.000000e+00> : vector<8xf32>
    %90 = vector.multi_reduction <add>, %89, %cst_50 [1] : vector<8x16xf32> to vector<8xf32>
    %91 = vector.shape_cast %90 : vector<8xf32> to vector<8x1xf32>
    %92 = tpu.reciprocal %91 {approx = true} : vector<8x1xf32> -> vector<8x1xf32>
    %93 = vector.broadcast %92 : vector<8x1xf32> to vector<8x16xf32>
    %94 = arith.mulf %89, %93 : vector<8x16xf32>
    %cst_51 = arith.constant dense<0.000000e+00> : vector<8x8xf32>
    %95 = tpu.matmul %94, %77, %cst_51 {dimension_numbers = #tpu.dot_dimension_numbers<[1], [0], [0], [1], [0, 0, 1, 1], [], []>} : vector<8x16xf32>, vector<16x8xf32>, vector<8x8xf32> -> vector<8x8xf32>
    %96 = vector.extract_strided_slice %16 {offsets = [0, 24], sizes = [8, 8], strides = [1, 1]} : vector<8x32xf32> to vector<8x8xf32>
    %cst_52 = arith.constant 0.353553385 : f32
    %97 = vector.broadcast %cst_52 : f32 to vector<8x8xf32>
    %98 = arith.mulf %96, %97 : vector<8x8xf32>
    %99 = vector.extract_strided_slice %21 {offsets = [0, 24], sizes = [16, 8], strides = [1, 1]} : vector<16x32xf32> to vector<16x8xf32>
    %100 = vector.extract_strided_slice %26 {offsets = [0, 24], sizes = [16, 8], strides = [1, 1]} : vector<16x32xf32> to vector<16x8xf32>
    %cst_53 = arith.constant dense<0.000000e+00> : vector<8x16xf32>
    %101 = tpu.matmul %98, %99, %cst_53 {dimension_numbers = #tpu.dot_dimension_numbers<[1], [1], [0], [0], [0, 0, 1, 0], [], []>} : vector<8x8xf32>, vector<16x8xf32>, vector<8x16xf32> -> vector<8x16xf32>
    %cst_54 = arith.constant 5.000000e-01 : f32
    %102 = vector.broadcast %cst_54 : f32 to vector<1x16xf32>
    %103 = arith.cmpf ogt, %9, %102 : vector<1x16xf32>
    %cst_55 = arith.constant -1.000000e+04 : f32
    %104 = vector.shape_cast %103 : vector<1x16xi1> to vector<1x16xi1>
    %105 = vector.broadcast %104 : vector<1x16xi1> to vector<8x16xi1>
    %106 = vector.broadcast %cst_55 : f32 to vector<8x16xf32>
    %107 = arith.select %105, %106, %101 : vector<8x16xi1>, vector<8x16xf32>
    %cst_56 = arith.constant dense<0xFF800000> : vector<8xf32>
    %108 = vector.multi_reduction <maximumf>, %107, %cst_56 [1] : vector<8x16xf32> to vector<8xf32>
    %109 = vector.shape_cast %108 : vector<8xf32> to vector<8x1xf32>
    %110 = vector.broadcast %109 : vector<8x1xf32> to vector<8x16xf32>
    %111 = arith.subf %107, %110 : vector<8x16xf32>
    %112 = math.exp %111 : vector<8x16xf32>
    %cst_57 = arith.constant dense<0.000000e+00> : vector<8xf32>
    %113 = vector.multi_reduction <add>, %112, %cst_57 [1] : vector<8x16xf32> to vector<8xf32>
    %114 = vector.shape_cast %113 : vector<8xf32> to vector<8x1xf32>
    %115 = tpu.reciprocal %114 {approx = true} : vector<8x1xf32> -> vector<8x1xf32>
    %116 = vector.broadcast %115 : vector<8x1xf32> to vector<8x16xf32>
    %117 = arith.mulf %112, %116 : vector<8x16xf32>
    %cst_58 = arith.constant dense<0.000000e+00> : vector<8x8xf32>
    %118 = tpu.matmul %117, %100, %cst_58 {dimension_numbers = #tpu.dot_dimension_numbers<[1], [0], [0], [1], [0, 0, 1, 1], [], []>} : vector<8x16xf32>, vector<16x8xf32>, vector<8x8xf32> -> vector<8x8xf32>
    %119 = tpu.concatenate %49, %72, %95, %118 in 1 : vector<8x8xf32>, vector<8x8xf32>, vector<8x8xf32>, vector<8x8xf32> -> vector<8x32xf32>
    %c0_59 = arith.constant 0 : index
    %c0_60 = arith.constant 0 : index
    %c0_61 = arith.constant 0 : index
    %120 = vector.load %arg19[%c0_59, %c0_60, %c0_61] : memref<1x8x32xf32, #tpu.memory_space<vmem>>, vector<1x8x32xf32>
    %121 = vector.shape_cast %120 : vector<1x8x32xf32> to vector<8x32xf32>
    %122 = vector.shape_cast %119 : vector<8x32xf32> to vector<1x8x32xf32>
    tpu.vector_store %arg19[%c0_59, %c0_60, %c0_61], %122 {strides = array<i32>} : memref<1x8x32xf32, #tpu.memory_space<vmem>>, vector<1x8x32xf32>,
    %c0_62 = arith.constant 0 : index
    %c0_63 = arith.constant 0 : index
    %123 = vector.load %arg13[%c0_62, %c0_63] : memref<32x32xf32, #tpu.memory_space<vmem>>, vector<32x32xf32>
    %cst_64 = arith.constant dense<0.000000e+00> : vector<16x32xf32>
    %124 = tpu.matmul %1, %123, %cst_64 {dimension_numbers = #tpu.dot_dimension_numbers<[1], [0], [0], [1], [0, 0, 1, 1], [], []>} : vector<16x32xf32>, vector<32x32xf32>, vector<16x32xf32> -> vector<16x32xf32>
    %c0_65 = arith.constant 0 : index
    %c0_66 = arith.constant 0 : index
    %125 = vector.load %arg14[%c0_65, %c0_66] : memref<1x32xf32, #tpu.memory_space<vmem>>, vector<1x32xf32>
    %126 = vector.broadcast %125 : vector<1x32xf32> to vector<16x32xf32>
    %127 = arith.addf %124, %126 : vector<16x32xf32>
    %c0_67 = arith.constant 0 : index
    %c0_68 = arith.constant 0 : index
    %128 = vector.load %arg15[%c0_67, %c0_68] : memref<32x64xf32, #tpu.memory_space<vmem>>, vector<32x64xf32>
    %cst_69 = arith.constant dense<0.000000e+00> : vector<8x64xf32>
    %129 = tpu.matmul %119, %128, %cst_69 {dimension_numbers = #tpu.dot_dimension_numbers<[1], [0], [0], [1], [0, 0, 1, 1], [], []>} : vector<8x32xf32>, vector<32x64xf32>, vector<8x64xf32> -> vector<8x64xf32>
    %c0_70 = arith.constant 0 : index
    %c0_71 = arith.constant 0 : index
    %130 = vector.load %arg16[%c0_70, %c0_71] : memref<1x64xf32, #tpu.memory_space<vmem>>, vector<1x64xf32>
    %131 = vector.broadcast %130 : vector<1x64xf32> to vector<8x64xf32>
    %132 = arith.addf %129, %131 : vector<8x64xf32>
    %133 = vector.extract_strided_slice %132 {offsets = [0, 0], sizes = [8, 32], strides = [1, 1]} : vector<8x64xf32> to vector<8x32xf32>
    %134 = vector.extract_strided_slice %132 {offsets = [0, 32], sizes = [8, 32], strides = [1, 1]} : vector<8x64xf32> to vector<8x32xf32>
    %135 = vector.extract_strided_slice %127 {offsets = [0, 0], sizes = [16, 8], strides = [1, 1]} : vector<16x32xf32> to vector<16x8xf32>
    %cst_72 = arith.constant 0.353553385 : f32
    %136 = vector.broadcast %cst_72 : f32 to vector<16x8xf32>
    %137 = arith.mulf %135, %136 : vector<16x8xf32>
    %138 = vector.extract_strided_slice %133 {offsets = [0, 0], sizes = [8, 8], strides = [1, 1]} : vector<8x32xf32> to vector<8x8xf32>
    %139 = vector.extract_strided_slice %134 {offsets = [0, 0], sizes = [8, 8], strides = [1, 1]} : vector<8x32xf32> to vector<8x8xf32>
    %cst_73 = arith.constant dense<0.000000e+00> : vector<16x8xf32>
    %140 = tpu.matmul %137, %138, %cst_73 {dimension_numbers = #tpu.dot_dimension_numbers<[1], [1], [0], [0], [0, 0, 1, 0], [], []>} : vector<16x8xf32>, vector<8x8xf32>, vector<16x8xf32> -> vector<16x8xf32>
    %cst_74 = arith.constant 5.000000e-01 : f32
    %141 = vector.broadcast %cst_74 : f32 to vector<1x8xf32>
    %142 = arith.cmpf ogt, %11, %141 : vector<1x8xf32>
    %cst_75 = arith.constant -1.000000e+04 : f32
    %143 = vector.shape_cast %142 : vector<1x8xi1> to vector<1x8xi1>
    %144 = vector.broadcast %143 : vector<1x8xi1> to vector<16x8xi1>
    %145 = vector.broadcast %cst_75 : f32 to vector<16x8xf32>
    %146 = arith.select %144, %145, %140 : vector<16x8xi1>, vector<16x8xf32>
    %cst_76 = arith.constant dense<0xFF800000> : vector<16xf32>
    %147 = vector.multi_reduction <maximumf>, %146, %cst_76 [1] : vector<16x8xf32> to vector<16xf32>
    %148 = vector.shape_cast %147 : vector<16xf32> to vector<16x1xf32>
    %149 = vector.broadcast %148 : vector<16x1xf32> to vector<16x8xf32>
    %150 = arith.subf %146, %149 : vector<16x8xf32>
    %151 = math.exp %150 : vector<16x8xf32>
    %cst_77 = arith.constant dense<0.000000e+00> : vector<16xf32>
    %152 = vector.multi_reduction <add>, %151, %cst_77 [1] : vector<16x8xf32> to vector<16xf32>
    %153 = vector.shape_cast %152 : vector<16xf32> to vector<16x1xf32>
    %154 = tpu.reciprocal %153 {approx = true} : vector<16x1xf32> -> vector<16x1xf32>
    %155 = vector.broadcast %154 : vector<16x1xf32> to vector<16x8xf32>
    %156 = arith.mulf %151, %155 : vector<16x8xf32>
    %cst_78 = arith.constant dense<0.000000e+00> : vector<16x8xf32>
    %157 = tpu.matmul %156, %139, %cst_78 {dimension_numbers = #tpu.dot_dimension_numbers<[1], [0], [0], [1], [0, 0, 1, 1], [], []>} : vector<16x8xf32>, vector<8x8xf32>, vector<16x8xf32> -> vector<16x8xf32>
    %158 = vector.extract_strided_slice %127 {offsets = [0, 8], sizes = [16, 8], strides = [1, 1]} : vector<16x32xf32> to vector<16x8xf32>
    %cst_79 = arith.constant 0.353553385 : f32
    %159 = vector.broadcast %cst_79 : f32 to vector<16x8xf32>
    %160 = arith.mulf %158, %159 : vector<16x8xf32>
    %161 = vector.extract_strided_slice %133 {offsets = [0, 8], sizes = [8, 8], strides = [1, 1]} : vector<8x32xf32> to vector<8x8xf32>
    %162 = vector.extract_strided_slice %134 {offsets = [0, 8], sizes = [8, 8], strides = [1, 1]} : vector<8x32xf32> to vector<8x8xf32>
    %cst_80 = arith.constant dense<0.000000e+00> : vector<16x8xf32>
    %163 = tpu.matmul %160, %161, %cst_80 {dimension_numbers = #tpu.dot_dimension_numbers<[1], [1], [0], [0], [0, 0, 1, 0], [], []>} : vector<16x8xf32>, vector<8x8xf32>, vector<16x8xf32> -> vector<16x8xf32>
    %cst_81 = arith.constant 5.000000e-01 : f32
    %164 = vector.broadcast %cst_81 : f32 to vector<1x8xf32>
    %165 = arith.cmpf ogt, %11, %164 : vector<1x8xf32>
    %cst_82 = arith.constant -1.000000e+04 : f32
    %166 = vector.shape_cast %165 : vector<1x8xi1> to vector<1x8xi1>
    %167 = vector.broadcast %166 : vector<1x8xi1> to vector<16x8xi1>
    %168 = vector.broadcast %cst_82 : f32 to vector<16x8xf32>
    %169 = arith.select %167, %168, %163 : vector<16x8xi1>, vector<16x8xf32>
    %cst_83 = arith.constant dense<0xFF800000> : vector<16xf32>
    %170 = vector.multi_reduction <maximumf>, %169, %cst_83 [1] : vector<16x8xf32> to vector<16xf32>
    %171 = vector.shape_cast %170 : vector<16xf32> to vector<16x1xf32>
    %172 = vector.broadcast %171 : vector<16x1xf32> to vector<16x8xf32>
    %173 = arith.subf %169, %172 : vector<16x8xf32>
    %174 = math.exp %173 : vector<16x8xf32>
    %cst_84 = arith.constant dense<0.000000e+00> : vector<16xf32>
    %175 = vector.multi_reduction <add>, %174, %cst_84 [1] : vector<16x8xf32> to vector<16xf32>
    %176 = vector.shape_cast %175 : vector<16xf32> to vector<16x1xf32>
    %177 = tpu.reciprocal %176 {approx = true} : vector<16x1xf32> -> vector<16x1xf32>
    %178 = vector.broadcast %177 : vector<16x1xf32> to vector<16x8xf32>
    %179 = arith.mulf %174, %178 : vector<16x8xf32>
    %cst_85 = arith.constant dense<0.000000e+00> : vector<16x8xf32>
    %180 = tpu.matmul %179, %162, %cst_85 {dimension_numbers = #tpu.dot_dimension_numbers<[1], [0], [0], [1], [0, 0, 1, 1], [], []>} : vector<16x8xf32>, vector<8x8xf32>, vector<16x8xf32> -> vector<16x8xf32>
    %181 = vector.extract_strided_slice %127 {offsets = [0, 16], sizes = [16, 8], strides = [1, 1]} : vector<16x32xf32> to vector<16x8xf32>
    %cst_86 = arith.constant 0.353553385 : f32
    %182 = vector.broadcast %cst_86 : f32 to vector<16x8xf32>
    %183 = arith.mulf %181, %182 : vector<16x8xf32>
    %184 = vector.extract_strided_slice %133 {offsets = [0, 16], sizes = [8, 8], strides = [1, 1]} : vector<8x32xf32> to vector<8x8xf32>
    %185 = vector.extract_strided_slice %134 {offsets = [0, 16], sizes = [8, 8], strides = [1, 1]} : vector<8x32xf32> to vector<8x8xf32>
    %cst_87 = arith.constant dense<0.000000e+00> : vector<16x8xf32>
    %186 = tpu.matmul %183, %184, %cst_87 {dimension_numbers = #tpu.dot_dimension_numbers<[1], [1], [0], [0], [0, 0, 1, 0], [], []>} : vector<16x8xf32>, vector<8x8xf32>, vector<16x8xf32> -> vector<16x8xf32>
    %cst_88 = arith.constant 5.000000e-01 : f32
    %187 = vector.broadcast %cst_88 : f32 to vector<1x8xf32>
    %188 = arith.cmpf ogt, %11, %187 : vector<1x8xf32>
    %cst_89 = arith.constant -1.000000e+04 : f32
    %189 = vector.shape_cast %188 : vector<1x8xi1> to vector<1x8xi1>
    %190 = vector.broadcast %189 : vector<1x8xi1> to vector<16x8xi1>
    %191 = vector.broadcast %cst_89 : f32 to vector<16x8xf32>
    %192 = arith.select %190, %191, %186 : vector<16x8xi1>, vector<16x8xf32>
    %cst_90 = arith.constant dense<0xFF800000> : vector<16xf32>
    %193 = vector.multi_reduction <maximumf>, %192, %cst_90 [1] : vector<16x8xf32> to vector<16xf32>
    %194 = vector.shape_cast %193 : vector<16xf32> to vector<16x1xf32>
    %195 = vector.broadcast %194 : vector<16x1xf32> to vector<16x8xf32>
    %196 = arith.subf %192, %195 : vector<16x8xf32>
    %197 = math.exp %196 : vector<16x8xf32>
    %cst_91 = arith.constant dense<0.000000e+00> : vector<16xf32>
    %198 = vector.multi_reduction <add>, %197, %cst_91 [1] : vector<16x8xf32> to vector<16xf32>
    %199 = vector.shape_cast %198 : vector<16xf32> to vector<16x1xf32>
    %200 = tpu.reciprocal %199 {approx = true} : vector<16x1xf32> -> vector<16x1xf32>
    %201 = vector.broadcast %200 : vector<16x1xf32> to vector<16x8xf32>
    %202 = arith.mulf %197, %201 : vector<16x8xf32>
    %cst_92 = arith.constant dense<0.000000e+00> : vector<16x8xf32>
    %203 = tpu.matmul %202, %185, %cst_92 {dimension_numbers = #tpu.dot_dimension_numbers<[1], [0], [0], [1], [0, 0, 1, 1], [], []>} : vector<16x8xf32>, vector<8x8xf32>, vector<16x8xf32> -> vector<16x8xf32>
    %204 = vector.extract_strided_slice %127 {offsets = [0, 24], sizes = [16, 8], strides = [1, 1]} : vector<16x32xf32> to vector<16x8xf32>
    %cst_93 = arith.constant 0.353553385 : f32
    %205 = vector.broadcast %cst_93 : f32 to vector<16x8xf32>
    %206 = arith.mulf %204, %205 : vector<16x8xf32>
    %207 = vector.extract_strided_slice %133 {offsets = [0, 24], sizes = [8, 8], strides = [1, 1]} : vector<8x32xf32> to vector<8x8xf32>
    %208 = vector.extract_strided_slice %134 {offsets = [0, 24], sizes = [8, 8], strides = [1, 1]} : vector<8x32xf32> to vector<8x8xf32>
    %cst_94 = arith.constant dense<0.000000e+00> : vector<16x8xf32>
    %209 = tpu.matmul %206, %207, %cst_94 {dimension_numbers = #tpu.dot_dimension_numbers<[1], [1], [0], [0], [0, 0, 1, 0], [], []>} : vector<16x8xf32>, vector<8x8xf32>, vector<16x8xf32> -> vector<16x8xf32>
    %cst_95 = arith.constant 5.000000e-01 : f32
    %210 = vector.broadcast %cst_95 : f32 to vector<1x8xf32>
    %211 = arith.cmpf ogt, %11, %210 : vector<1x8xf32>
    %cst_96 = arith.constant -1.000000e+04 : f32
    %212 = vector.shape_cast %211 : vector<1x8xi1> to vector<1x8xi1>
    %213 = vector.broadcast %212 : vector<1x8xi1> to vector<16x8xi1>
    %214 = vector.broadcast %cst_96 : f32 to vector<16x8xf32>
    %215 = arith.select %213, %214, %209 : vector<16x8xi1>, vector<16x8xf32>
    %cst_97 = arith.constant dense<0xFF800000> : vector<16xf32>
    %216 = vector.multi_reduction <maximumf>, %215, %cst_97 [1] : vector<16x8xf32> to vector<16xf32>
    %217 = vector.shape_cast %216 : vector<16xf32> to vector<16x1xf32>
    %218 = vector.broadcast %217 : vector<16x1xf32> to vector<16x8xf32>
    %219 = arith.subf %215, %218 : vector<16x8xf32>
    %220 = math.exp %219 : vector<16x8xf32>
    %cst_98 = arith.constant dense<0.000000e+00> : vector<16xf32>
    %221 = vector.multi_reduction <add>, %220, %cst_98 [1] : vector<16x8xf32> to vector<16xf32>
    %222 = vector.shape_cast %221 : vector<16xf32> to vector<16x1xf32>
    %223 = tpu.reciprocal %222 {approx = true} : vector<16x1xf32> -> vector<16x1xf32>
    %224 = vector.broadcast %223 : vector<16x1xf32> to vector<16x8xf32>
    %225 = arith.mulf %220, %224 : vector<16x8xf32>
    %cst_99 = arith.constant dense<0.000000e+00> : vector<16x8xf32>
    %226 = tpu.matmul %225, %208, %cst_99 {dimension_numbers = #tpu.dot_dimension_numbers<[1], [0], [0], [1], [0, 0, 1, 1], [], []>} : vector<16x8xf32>, vector<8x8xf32>, vector<16x8xf32> -> vector<16x8xf32>
    %227 = tpu.concatenate %157, %180, %203, %226 in 1 : vector<16x8xf32>, vector<16x8xf32>, vector<16x8xf32>, vector<16x8xf32> -> vector<16x32xf32>
    %c0_100 = arith.constant 0 : index
    %c0_101 = arith.constant 0 : index
    %228 = vector.load %arg17[%c0_100, %c0_101] : memref<32x32xf32, #tpu.memory_space<vmem>>, vector<32x32xf32>
    %cst_102 = arith.constant dense<0.000000e+00> : vector<16x32xf32>
    %229 = tpu.matmul %227, %228, %cst_102 {dimension_numbers = #tpu.dot_dimension_numbers<[1], [0], [0], [1], [0, 0, 1, 1], [], []>} : vector<16x32xf32>, vector<32x32xf32>, vector<16x32xf32> -> vector<16x32xf32>
    %c0_103 = arith.constant 0 : index
    %c0_104 = arith.constant 0 : index
    %230 = vector.load %arg18[%c0_103, %c0_104] : memref<1x32xf32, #tpu.memory_space<vmem>>, vector<1x32xf32>
    %231 = vector.broadcast %230 : vector<1x32xf32> to vector<16x32xf32>
    %232 = arith.addf %229, %231 : vector<16x32xf32>
    %c0_105 = arith.constant 0 : index
    %c0_106 = arith.constant 0 : index
    %c0_107 = arith.constant 0 : index
    %233 = vector.load %arg20[%c0_105, %c0_106, %c0_107] : memref<1x16x32xf32, #tpu.memory_space<vmem>>, vector<1x16x32xf32>
    %234 = vector.shape_cast %233 : vector<1x16x32xf32> to vector<16x32xf32>
    %235 = vector.shape_cast %232 : vector<16x32xf32> to vector<1x16x32xf32>
    tpu.vector_store %arg20[%c0_105, %c0_106, %c0_107], %235 {strides = array<i32>} : memref<1x16x32xf32, #tpu.memory_space<vmem>>, vector<1x16x32xf32>,
    return
  }
  func.func @transform_0(%arg0: i32) -> (i32, i32, i32) {
    %c0_i32 = arith.constant 0 : i32
    %c0_i32_0 = arith.constant 0 : i32
    %c0_i32_1 = arith.constant 0 : i32
    return %arg0, %c0_i32, %c0_i32_0 : i32, i32, i32
  }
  func.func @transform_1(%arg0: i32) -> (i32, i32, i32) {
    %c0_i32 = arith.constant 0 : i32
    %c0_i32_0 = arith.constant 0 : i32
    %c0_i32_1 = arith.constant 0 : i32
    return %arg0, %c0_i32, %c0_i32_0 : i32, i32, i32
  }
  func.func @transform_2(%arg0: i32) -> (i32, i32, i32) {
    %c0_i32 = arith.constant 0 : i32
    %c0_i32_0 = arith.constant 0 : i32
    %c0_i32_1 = arith.constant 0 : i32
    return %arg0, %c0_i32, %c0_i32_0 : i32, i32, i32
  }
  func.func @transform_3(%arg0: i32) -> (i32, i32, i32) {
    %c0_i32 = arith.constant 0 : i32
    %c0_i32_0 = arith.constant 0 : i32
    %c0_i32_1 = arith.constant 0 : i32
    return %arg0, %c0_i32, %c0_i32_0 : i32, i32, i32
  }
  func.func @transform_4(%arg0: i32) -> (i32, i32, i32) {
    %c0_i32 = arith.constant 0 : i32
    %c0_i32_0 = arith.constant 0 : i32
    %c0_i32_1 = arith.constant 0 : i32
    return %arg0, %c0_i32, %c0_i32_0 : i32, i32, i32
  }
  func.func @transform_5(%arg0: i32) -> (i32, i32, i32) {
    %c0_i32 = arith.constant 0 : i32
    %c0_i32_0 = arith.constant 0 : i32
    %c0_i32_1 = arith.constant 0 : i32
    return %arg0, %c0_i32, %c0_i32_0 : i32, i32, i32
  }
  func.func @transform_6(%arg0: i32) -> (i32, i32) {
    %c0_i32 = arith.constant 0 : i32
    %c0_i32_0 = arith.constant 0 : i32
    %c0_i32_1 = arith.constant 0 : i32
    return %c0_i32, %c0_i32_0 : i32, i32
  }
  func.func @transform_7(%arg0: i32) -> (i32, i32) {
    %c0_i32 = arith.constant 0 : i32
    %c0_i32_0 = arith.constant 0 : i32
    %c0_i32_1 = arith.constant 0 : i32
    return %c0_i32, %c0_i32_0 : i32, i32
  }
  func.func @transform_8(%arg0: i32) -> (i32, i32) {
    %c0_i32 = arith.constant 0 : i32
    %c0_i32_0 = arith.constant 0 : i32
    %c0_i32_1 = arith.constant 0 : i32
    return %c0_i32, %c0_i32_0 : i32, i32
  }
  func.func @transform_9(%arg0: i32) -> (i32, i32) {
    %c0_i32 = arith.constant 0 : i32
    %c0_i32_0 = arith.constant 0 : i32
    %c0_i32_1 = arith.constant 0 : i32
    return %c0_i32, %c0_i32_0 : i32, i32
  }
  func.func @transform_10(%arg0: i32) -> (i32, i32) {
    %c0_i32 = arith.constant 0 : i32
    %c0_i32_0 = arith.constant 0 : i32
    %c0_i32_1 = arith.constant 0 : i32
    return %c0_i32, %c0_i32_0 : i32, i32
  }
  func.func @transform_11(%arg0: i32) -> (i32, i32) {
    %c0_i32 = arith.constant 0 : i32
    %c0_i32_0 = arith.constant 0 : i32
    %c0_i32_1 = arith.constant 0 : i32
    return %c0_i32, %c0_i32_0 : i32, i32
  }
  func.func @transform_12(%arg0: i32) -> (i32, i32) {
    %c0_i32 = arith.constant 0 : i32
    %c0_i32_0 = arith.constant 0 : i32
    %c0_i32_1 = arith.constant 0 : i32
    return %c0_i32, %c0_i32_0 : i32, i32
  }
  func.func @transform_13(%arg0: i32) -> (i32, i32) {
    %c0_i32 = arith.constant 0 : i32
    %c0_i32_0 = arith.constant 0 : i32
    %c0_i32_1 = arith.constant 0 : i32
    return %c0_i32, %c0_i32_0 : i32, i32
  }
  func.func @transform_14(%arg0: i32) -> (i32, i32) {
    %c0_i32 = arith.constant 0 : i32
    %c0_i32_0 = arith.constant 0 : i32
    %c0_i32_1 = arith.constant 0 : i32
    return %c0_i32, %c0_i32_0 : i32, i32
  }
  func.func @transform_15(%arg0: i32) -> (i32, i32) {
    %c0_i32 = arith.constant 0 : i32
    %c0_i32_0 = arith.constant 0 : i32
    %c0_i32_1 = arith.constant 0 : i32
    return %c0_i32, %c0_i32_0 : i32, i32
  }
  func.func @transform_16(%arg0: i32) -> (i32, i32) {
    %c0_i32 = arith.constant 0 : i32
    %c0_i32_0 = arith.constant 0 : i32
    %c0_i32_1 = arith.constant 0 : i32
    return %c0_i32, %c0_i32_0 : i32, i32
  }
  func.func @transform_17(%arg0: i32) -> (i32, i32) {
    %c0_i32 = arith.constant 0 : i32
    %c0_i32_0 = arith.constant 0 : i32
    %c0_i32_1 = arith.constant 0 : i32
    return %c0_i32, %c0_i32_0 : i32, i32
  }
  func.func @transform_18(%arg0: i32) -> (i32, i32, i32) {
    %c0_i32 = arith.constant 0 : i32
    %c0_i32_0 = arith.constant 0 : i32
    %c0_i32_1 = arith.constant 0 : i32
    return %arg0, %c0_i32, %c0_i32_0 : i32, i32, i32
  }
  func.func @transform_19(%arg0: i32) -> (i32, i32, i32) {
    %c0_i32 = arith.constant 0 : i32
    %c0_i32_0 = arith.constant 0 : i32
    %c0_i32_1 = arith.constant 0 : i32
    return %arg0, %c0_i32, %c0_i32_0 : i32, i32, i32
  }
}

</mosaic_0001>

<bundles_post_ra>
// kernel: luna_attention_forward.1
= control target key start
LH: loop header
LB: loop body
LE: loop exit
PB: predicated region body
PF: predicated region fallthrough
CT: control target
= control target key end

     0   :  { %s5188_s0 = inlined_call_operand.hbm [shape: f32[2,16,32], index: 0, kind: input, shape index: {}]   ;;  %s5189_s1 = inlined_call_operand.vmem [shape: f32[2,16,32], index: 1, kind: input, shape index: {}]   ;;  %s5190_s2 = inlined_call_operand.hbm [shape: f32[2,16,32], index: 2, kind: input, shape index: {}]   ;;  %s5191_s3 = inlined_call_operand.hbm [shape: f32[2,8,32], index: 3, kind: input, shape index: {}]   ;;  %s5192_s4 = inlined_call_operand.vmem [shape: f32[2,1,16], index: 4, kind: input, shape index: {}]   ;;  %s5193_s5 = inlined_call_operand.vmem [shape: f32[2,1,8], index: 5, kind: input, shape index: {}]   ;;  %s5194_s6 = inlined_call_operand.hbm [shape: f32[32,32], index: 6, kind: input, shape index: {}]   ;;  %s5195_s7 = inlined_call_operand.vmem [shape: f32[1,32], index: 7, kind: input, shape index: {}]   ;;  %s5196_s8 = inlined_call_operand.hbm [shape: f32[32,32], index: 8, kind: input, shape index: {}]   ;;  %s5197_s9 = inlined_call_operand.hbm [shape: f32[1,32], index: 9, kind: input, shape index: {}]   ;;  %s5198_s10 = inlined_call_operand.hbm [shape: f32[32,32], index: 10, kind: input, shape index: {}]   ;;  %s5199_s11 = inlined_call_operand.hbm [shape: f32[1,32], index: 11, kind: input, shape index: {}]   ;;  %s5200_s12 = inlined_call_operand.hbm [shape: f32[32,32], index: 12, kind: input, shape index: {}]   ;;  %s5201_s13 = inlined_call_operand.hbm [shape: f32[1,32], index: 13, kind: input, shape index: {}]   ;;  %s5202_s14 = inlined_call_operand.hbm [shape: f32[32,64], index: 14, kind: input, shape index: {}]   ;;  %s5203_s15 = inlined_call_operand.hbm [shape: f32[1,64], index: 15, kind: input, shape index: {}]   ;;  %s5204_s16 = inlined_call_operand.hbm [shape: f32[32,32], index: 16, kind: input, shape index: {}]   ;;  %s5205_s17 = inlined_call_operand.hbm [shape: f32[1,32], index: 17, kind: input, shape index: {}]   ;;  %s5206_s18 = inlined_call_operand.hbm [shape: f32[2,8,32], index: 18, kind: output, shape index: {0}]   ;;  %s5207_s19 = inlined_call_operand.hbm [shape: f32[2,16,32], index: 19, kind: output, shape index: {1}]  }
   0x1   :  { %5233 = sst [smem:[#allocation42_spill]] %s5188_s0 }
   0x2   :  { %5234 = sst [smem:[#allocation43_spill]] %s5189_s1 }
   0x3   :  { %5235 = sst [smem:[#allocation44_spill]] %s5190_s2 }
   0x4   :  { %5236 = sst [smem:[#allocation45_spill]] %s5191_s3 }
   0x5   :  { %5237 = sst [smem:[#allocation46_spill]] %s5192_s4 }
   0x6   :  { %5238 = sst [smem:[#allocation47_spill]] %s5193_s5 }
   0x7   :  { %5239 = sst [smem:[#allocation48_spill]] %s5194_s6 }
   0x8   :  { %5240 = sst [smem:[#allocation49_spill]] %s5196_s8 }
   0x9   :  { %5241 = sst [smem:[#allocation50_spill]] %s5197_s9 }
   0xa   :  { %5242 = sst [smem:[#allocation51_spill]] %s5198_s10 }
   0xb   :  { %5243 = sst [smem:[#allocation52_spill]] %s5199_s11 }
   0xc   :  { %5244 = sst [smem:[#allocation53_spill]] %s5200_s12 }
   0xd   :  { %5245 = sst [smem:[#allocation54_spill]] %s5201_s13 }
   0xe   :  { %5246 = sst [smem:[#allocation55_spill]] %s5202_s14 }
   0xf   :  { %5247 = sst [smem:[#allocation56_spill]] %s5203_s15 }
  0x10   :  { %5248 = sst [smem:[#allocation57_spill]] %s5204_s16 }
  0x11   :  { %5249 = sst [smem:[#allocation58_spill]] %s5206_s18 }
  0x12   :  { %5250 = sst [smem:[#allocation59_spill]] %s5207_s19 }
  0x13   :  { %25 = vsyncpa [#allocation3], 0 }
  0x14   :  { %27 = vsyncpa [#allocation3 + $0x1], 0 }
  0x15   :  { %28 = vsyncpa [#allocation6], 0 }
  0x16   :  { %30 = vsyncpa [#allocation6 + $0x1], 0 }
  0x17   :  { %31 = vsyncpa [#allocation9], 0 }
  0x18   :  { %32 = vsyncpa [#allocation12], 0 }
  0x19   :  { %33 = vsyncpa [#allocation15], 0 }
  0x1a   :  { %34 = vsyncpa [#allocation18], 0 }
  0x1b   :  { %35 = vsyncpa [#allocation21], 0 }
  0x1c   :  { %36 = vsyncpa [#allocation24], 0 }
  0x1d   :  { %37 = vsyncpa [#allocation4], 0 }
  0x1e   :  { %39 = vsyncpa [#allocation4 + $0x1], 0 }
  0x1f   :  { %40 = vsyncpa [#allocation27], 0 }
  0x20   :  { %42 = vsyncpa [#allocation27 + $0x1], 0  ;;  %s4505_s0 = smov 0   ;;  %s4507_s30 = smov 0  }
  0x21   :  { %s4509_s20 = smov 0   ;;  %s4511_s21 = smov 0  }
  0x22 LB: > { %5251 = sst [smem:[#allocation38_spill]] %s4367_s20  ;;  %s4373_s1 = smov [#allocation8]   ;;  %s4371_s21 = sphi %s4511_s21, %s5308_s21   ;;  %s4367_s20 = sphi %s4509_s20, %s5310_s20   ;;  %s4363_s30 = sphi %s4507_s30, %s5312_s30   ;;  %s4359_s0 = sphi %s4505_s0, %s5311_s0  }
  0x23   : > { %s525_s22 = sshll.u32 %s4373_s1, 4  ;;  %s4526_s2 = sadd.s32 4294967295, %s4371_s21   ;;  %s526_s22 = int_to_ptr.vmem [resolvable:$true] %s525_s22 }
  0x24   : > { %p3296_p0 = scmp.ge.s32.totalorder %s4371_s21, 1  ;;  %p5215_p1 = scmp.eq.s32.totalorder %s4526_s2, 0 }
  0x25   : > { %p513_p2 = scmp.lt.s32.totalorder %s4371_s21, 3  ;;  %s4374_s24 = smov [#allocation11]  }
  0x26   : > { %s555_s25 = sshll.u32 %s4374_s24, 4  ;;  %s4375_s26 = smov [#allocation14]   ;;  %s556_s25 = int_to_ptr.vmem [resolvable:$true] %s555_s25 }
  0x27   : > { %p4531_p3 = pnand %p3296_p0, %p513_p2  ;;  %s579_s27 = sshll.u32 %s4375_s26, 4  ;;  %s4544_s27 = int_to_ptr.vmem [resolvable:$true] %s579_s27 }
  0x28   : > { %s3890_s29 = scalar_lea.vmem %s526_s22, 512  ;;  %p3898_p11 = scmp.lt.s32.totalorder %s526_s22, %s526_s22 }
  0x29   : > { %s5252_s23 = scalar_select %p4531_p3, 1, 0 }
  0x2a   : > { %p3697_p5 = pneg %p4531_p3  ;;  %p3891_p8 = scmp.ne.s32.totalorder %s526_s22, %s3890_s29 }
  0x2b   : > { %p3899_p12 = scmp.lt.s32.totalorder %s3890_s29, %s3890_s29 }
  0x2c   : > { %p4540_p6 = pnand %p3697_p5, %p5215_p1 }
  0x2d   : > { %p3900_p13 = por %p3899_p12, %p3898_p11 }
  0x2e   : > { %s5253_s3 = scalar_select %p4540_p6, 1, 0 }
  0x2f   : > { %p4548_p7 = pneg %p4540_p6 }
  0x31   : > { %s5254_s28 = scalar_select %p4548_p7, 1, 0 }
  0x32   : > { %p3893_p9 = pnand %p3891_p8, %p4548_p7 }
  0x34   : > { %p3894_p10 = pneg %p3893_p9 }
  0x36   : > { %p3901_p0 = pnand %p3900_p13, %p3894_p10 }
  0x38   : > { %3904 = shalt.err (!%p3901_p0)
}
  0x39   : > { %s5213_s1 = smov 128   ;;  %s5217_s24 = smov 8  }
  0x3a   : > { %s5255_s6 = sld [smem:[#allocation48_spill]]  ;;  %s3916_s18 = scalar_lea.vmem %s556_s25, 16 }
  0x3b   : > { %p3917_p2 = scmp.ne.s32.totalorder %s556_s25, %s3916_s18  ;;  %s3923_s29 = scalar_lea.vmem %s556_s25, 32 }
  0x3c   : > { %p3924_p9 = scmp.lt.s32.totalorder %s556_s25, %s556_s25  ;;  %p3925_p10 = scmp.lt.s32.totalorder %s3923_s29, %s3916_s18 }
  0x3d   : > { %p3919_p5 = pnand %p3917_p2, %p4548_p7 }
  0x3e   : > { %p3926_p11 = por %p3925_p10, %p3924_p9 }
  0x3f   : > { %p3920_p8 = pneg %p3919_p5 }
  0x40   : > { %3700 = dma.hbm_to_vmem [thread:$0]  (!%p4540_p6), %s5255_s6, 512, %s526_s22, [#allocation9], %s5213_s1, %s5213_s1, %s5217_s24  }
  0x41   : > { %p3927_p12 = pnand %p3926_p11, %p3920_p8 }
  0x43   : > { %3930 = shalt.err (!%p3927_p12)
}
  0x44   : > { %s5256_s9 = sld [smem:[#allocation50_spill]]  ;;  %s3942_s19 = scalar_lea.vmem %s4544_s27, 16 }
  0x45   : > { %p3943_p13 = scmp.ne.s32.totalorder %s4544_s27, %s3942_s19  ;;  %s3949_s18 = scalar_lea.vmem %s4544_s27, 32 }
  0x46   : > { %p3950_p5 = scmp.lt.s32.totalorder %s4544_s27, %s4544_s27  ;;  %p3951_p8 = scmp.lt.s32.totalorder %s3949_s18, %s3942_s19 }
  0x47   : > { %p3945_p0 = pnand %p3943_p13, %p4548_p7 }
  0x48   : > { %p3952_p9 = por %p3951_p8, %p3950_p5 }
  0x49   : > { %p3946_p2 = pneg %p3945_p0 }
  0x4a   : > { %3706 = dma.hbm_to_vmem [thread:$0]  (!%p4540_p6), %s5256_s9, 16, %s556_s25, [#allocation12]  }
  0x4b   : > { %p3953_p10 = pnand %p3952_p9, %p3946_p2 }
  0x4d   : > { %3956 = shalt.err (!%p3953_p10)
}
  0x4e   : > { %s5257_s11 = sld [smem:[#allocation52_spill]]  ;;  %s4378_s22 = smov [#allocation17]  }
  0x4f   : > { %s603_s25 = sshll.u32 %s4378_s22, 4  ;;  %s4379_s26 = smov [#allocation20]   ;;  %s604_s25 = int_to_ptr.vmem [resolvable:$true] %s603_s25 }
  0x50   : > { %s627_s29 = sshll.u32 %s4379_s26, 4  ;;  %s3968_s1 = scalar_lea.vmem %s604_s25, 16  ;;  %s628_s29 = int_to_ptr.vmem [resolvable:$true] %s627_s29 }
  0x51   : > { %p3969_p11 = scmp.ne.s32.totalorder %s604_s25, %s3968_s1  ;;  %s3975_s19 = scalar_lea.vmem %s604_s25, 32 }
  0x52   : > { %p3976_p0 = scmp.lt.s32.totalorder %s604_s25, %s604_s25  ;;  %p3977_p2 = scmp.lt.s32.totalorder %s3975_s19, %s3968_s1 }
  0x53   : > { %p3971_p12 = pnand %p3969_p11, %p4548_p7 }
  0x54   : > { %3712 = dma.hbm_to_vmem [thread:$0]  (!%p4540_p6), %s5257_s11, 16, %s4544_s27, [#allocation15]  }
  0x55   : > { %p3972_p13 = pneg %p3971_p12  ;;  %p3978_p5 = por %p3977_p2, %p3976_p0 }
  0x57   : > { %p3979_p8 = pnand %p3978_p5, %p3972_p13 }
  0x59   : > { %3982 = shalt.err (!%p3979_p8)
}
  0x5a   : > { %s5258_s13 = sld [smem:[#allocation54_spill]]  ;;  %s3994_s4 = scalar_lea.vmem %s628_s29, 16 }
  0x5b   : > { %p3995_p9 = scmp.ne.s32.totalorder %s628_s29, %s3994_s4  ;;  %s4001_s5 = scalar_lea.vmem %s628_s29, 32 }
  0x5c   : > { %p4002_p12 = scmp.lt.s32.totalorder %s628_s29, %s628_s29  ;;  %p4003_p4 = scmp.lt.s32.totalorder %s4001_s5, %s3994_s4 }
  0x5d   : > { %p3997_p10 = pnand %p3995_p9, %p4548_p7 }
  0x5e   : > { %p4004_p1 = por %p4003_p4, %p4002_p12 }
  0x5f   : > { %p3998_p11 = pneg %p3997_p10 }
  0x60   : > { %3718 = dma.hbm_to_vmem [thread:$0]  (!%p4540_p6), %s5258_s13, 16, %s604_s25, [#allocation18]  }
  0x61   : > { %p4005_p0 = pnand %p4004_p1, %p3998_p11 }
  0x63   : > { %4008 = shalt.err (!%p4005_p0)
}
  0x64   : > { %s5259_s15 = sld [smem:[#allocation56_spill]]  ;;  %s3295_s25 = sadd.s32 4294967294, %s4371_s21  }
  0x65   : > { %s4598_s26 = sadd.s32 1, %s4371_s21   ;;  %s55_s19 = sadd.s32 1, %s4367_s20 }
  0x66   : > { %5260 = sst [smem:[#allocation39_spill]] %s4598_s26  ;;  %s52_s18 = ssub.s32 %s4371_s21, %s4598_s26 }
  0x67   : > { %p62_p1 = scmp.ne.s32.totalorder %s4367_s20, %s4363_s30  ;;  %p53_p4 = scmp.eq.s32.totalorder %s52_s18, 0 }
  0x68   : > { %p63_p13 = scmp.eq.s32.totalorder %s4371_s21, 0  ;;  %p68_p2 = scmp.ne.s32.totalorder %s4363_s30, %s4359_s0 }
  0x69   : > { %p474_p5 = scmp.eq.s32.totalorder %s4526_s2, 1  ;;  %p5262_p9 = scmp.eq.s32.totalorder %s4526_s2, 0 }
  0x6a   : > { %3724 = dma.hbm_to_vmem [thread:$0]  (!%p4540_p6), %s5259_s15, 16, %s628_s29, [#allocation21]  }
  0x6b   : > { %s4610_s27 = scalar_select %p53_p4, %s4367_s20, %s55_s19  }
  0x6c   : > { %p64_p8 = por %p63_p13, %p62_p1  ;;  %p4614_p10 = por %p5262_p9, %p68_p2 }
  0x6d   : > { %5261 = sst [smem:[#allocation40_spill]] %s4610_s27  ;;  %p4618_p11 = por %p474_p5, %p62_p1 }
  0x6e   : > { %s5263_s29 = scalar_select %p4614_p10, 1, 0 }
  0x6f   : > { %s5264_s4 = scalar_select %p4618_p11, 1, 0 }
  0x70   : > { %p480_p12 = scmp.eq.s32.totalorder %s3295_s25, 1  ;;  %p3759_p0 = scmp.lt.s32.totalorder %s4371_s21, 2 }
  0x71   : > { %s4624_s5 = sand.u32 1, %s4367_s20   ;;  %s5223_s19 = sshll.u32 %s4371_s21, 8 }
  0x72   : > { %p4626_p3 = por %p480_p12, %p68_p2  ;;  %s5222_s22 = sshll.u32 %s4624_s5, 4 }
  0x73   : > { %p4632_p4 = pnand %p3759_p0, %p64_p8  ;;  %s691_s24 = sand.u32 1, %s4371_s21  }
  0x74   : > { %s5265_s1 = scalar_select %p4626_p3, 1, 0 }
  0x75   : > { %s5268_s9 = sld [smem:[#allocation44_spill]]  ;;  %s695_s13 = scalar_lea.vmem [#allocation5], %s5222_s22 }
  0x76   : > { %5266 = sst [smem:[#allocation41_spill]] %s5265_s1  ;;  %s702_s15 = sshll.u32 %s695_s13, 4  ;;  %s4646_s15 = int_to_ptr.vmem [resolvable:$true] %s702_s15 }
  0x77   : > { %s4648_s27 = scalar_lea.sflag [#allocation6], %s691_s24  ;;  %p4654_p13 = pneg %p4632_p4 }
  0x7b   : > { %s4642_s11 = scalar_lea.hbm %s5268_s9, %s5223_s19  ;;  %s4014_s22 = scalar_lea.hbm %s5268_s9, 512 }
  0x7c   : > { %s4009_s20 = scalar_lea.hbm %s4642_s11, 256  ;;  %p4015_p8 = scmp.lt.s32.totalorder %s4642_s11, %s5268_s9 }
  0x7d   : > { %p4010_p1 = scmp.ne.s32.totalorder %s4642_s11, %s4009_s20  ;;  %p4016_p9 = scmp.lt.s32.totalorder %s4014_s22, %s4009_s20 }
  0x7f   : > { %p4012_p2 = pnand %p4654_p13, %p4010_p1  ;;  %p4017_p12 = por %p4016_p9, %p4015_p8 }
  0x81   : > { %p4013_p5 = pneg %p4012_p2 }
  0x83   : > { %p4018_p0 = pnand %p4017_p12, %p4013_p5 }
  0x85   : > { %4021 = shalt.err (!%p4018_p0)
}
  0x86   : > { %s4022_s24 = scalar_lea.vmem %s4646_s15, 256  ;;  %s4380_s1 = smov [#allocation5]  }
  0x87   : > { %p4023_p3 = scmp.ne.s32.totalorder %s4646_s15, %s4022_s24  ;;  %s4027_s6 = sshll.u32 %s4380_s1, 4  ;;  %s4028_s6 = int_to_ptr.vmem [resolvable:$false] %s4027_s6 }
  0x88   : > { %s4029_s25 = scalar_lea.vmem %s4028_s6, 512  ;;  %p4030_p11 = scmp.lt.s32.totalorder %s4646_s15, %s4028_s6 }
  0x89   : > { %p4025_p1 = pnand %p4023_p3, %p4654_p13  ;;  %p4031_p10 = scmp.lt.s32.totalorder %s4029_s25, %s4022_s24 }
  0x8b   : > { %p4026_p2 = pneg %p4025_p1  ;;  %p4032_p6 = por %p4031_p10, %p4030_p11 }
  0x8d   : > { %p4033_p7 = pnand %p4032_p6, %p4026_p2 }
  0x8f   : > { %4036 = shalt.err (!%p4033_p7)
}
  0x90   : > { %s5270_s20 = smov 8   ;;  %s5271_s22 = smov 128  }
  0x91   : > { %3737 = dma.hbm_to_vmem [thread:$0]  (!%p4632_p4), %s4642_s11, 256, %s4646_s15, %s4648_s27, %s5271_s22, %s5271_s22, %s5270_s20  }
  0x92   : > { %s4381_s19 = smov [#allocation10]   ;;  %s4382_s1 = smov [#allocation13]  }
  0x93   : > { %s541_s13 = sshll.u32 %s4381_s19, 4  ;;  %s565_s9 = sshll.u32 %s4382_s1, 4  ;;  %s542_s13 = int_to_ptr.vmem [resolvable:$true] %s541_s13  ;;  %s566_s9 = int_to_ptr.vmem [resolvable:$true] %s565_s9 }
  0x94   : > { %s4048_s6 = scalar_lea.vmem %s542_s13, 512  ;;  %p5272_p10 = scmp.ne.s32.totalorder %s5254_s28, 0 }
  0x95   : > { %p4049_p3 = scmp.ne.s32.totalorder %s542_s13, %s4048_s6  ;;  %p4056_p11 = scmp.lt.s32.totalorder %s542_s13, %s542_s13 }
  0x96   : > { %p4057_p5 = scmp.lt.s32.totalorder %s4048_s6, %s4048_s6 }
  0x97   : > { %p4051_p6 = pnand %p4049_p3, %p5272_p10 }
  0x98   : > { %p4058_p8 = por %p4057_p5, %p4056_p11 }
  0x99   : > { %p4052_p7 = pneg %p4051_p6 }
  0x9b   : > { %p4059_p9 = pnand %p4058_p8, %p4052_p7 }
  0x9d   : > { %4062 = shalt.err (!%p4059_p9)
}
  0x9e   : > { %p5273_p12 = scmp.ne.s32.totalorder %s5253_s3, 0  ;;  %s5274_s8 = sld [smem:[#allocation49_spill]] }
  0x9f   : > { %s4074_s24 = scalar_lea.vmem %s566_s9, 512  ;;  %p4082_p3 = scmp.lt.s32.totalorder %s566_s9, %s566_s9 }
  0xa0   : > { %p4075_p0 = scmp.ne.s32.totalorder %s566_s9, %s4074_s24  ;;  %p4083_p6 = scmp.lt.s32.totalorder %s4074_s24, %s4074_s24 }
  0xa2   : > { %p4077_p1 = pnand %p4075_p0, %p5272_p10  ;;  %p4084_p7 = por %p4083_p6, %p4082_p3 }
  0xa4   : > { %3703 = dma.hbm_to_vmem [thread:$0]  (!%p5273_p12), %s5274_s8, 512, %s542_s13, [#allocation9], %s5271_s22, %s5271_s22, %s5270_s20  }
  0xa5   : > { %p4078_p2 = pneg %p4077_p1 }
  0xa7   : > { %p4085_p11 = pnand %p4084_p7, %p4078_p2 }
  0xa9   : > { %4088 = shalt.err (!%p4085_p11)
}
  0xaa   : > { %s5275_s10 = sld [smem:[#allocation51_spill]]  ;;  %s4383_s13 = smov [#allocation16]  }
  0xab   : > { %s589_s1 = sshll.u32 %s4383_s13, 4  ;;  %s4384_s6 = smov [#allocation19]   ;;  %s590_s1 = int_to_ptr.vmem [resolvable:$true] %s589_s1 }
  0xac   : > { %s613_s11 = sshll.u32 %s4384_s6, 4  ;;  %s4100_s15 = scalar_lea.vmem %s590_s1, 512  ;;  %s614_s11 = int_to_ptr.vmem [resolvable:$true] %s613_s11 }
  0xad   : > { %p4101_p5 = scmp.ne.s32.totalorder %s590_s1, %s4100_s15  ;;  %p4108_p0 = scmp.lt.s32.totalorder %s590_s1, %s590_s1 }
  0xae   : > { %p4109_p1 = scmp.lt.s32.totalorder %s4100_s15, %s4100_s15 }
  0xaf   : > { %p4103_p8 = pnand %p4101_p5, %p5272_p10 }
  0xb0   : > { %3709 = dma.hbm_to_vmem [thread:$0]  (!%p5273_p12), %s5275_s10, 512, %s566_s9, [#allocation12], %s5271_s22, %s5271_s22, %s5270_s20  }
  0xb1   : > { %p4104_p9 = pneg %p4103_p8  ;;  %p4110_p2 = por %p4109_p1, %p4108_p0 }
  0xb3   : > { %p4111_p3 = pnand %p4110_p2, %p4104_p9 }
  0xb5   : > { %4114 = shalt.err (!%p4111_p3)
}
  0xb6   : > { %s5276_s12 = sld [smem:[#allocation53_spill]]  ;;  %s4126_s25 = scalar_lea.vmem %s614_s11, 512 }
  0xb7   : > { %p4127_p6 = scmp.ne.s32.totalorder %s614_s11, %s4126_s25  ;;  %p4134_p5 = scmp.lt.s32.totalorder %s614_s11, %s614_s11 }
  0xb8   : > { %p4135_p8 = scmp.lt.s32.totalorder %s4126_s25, %s4126_s25 }
  0xb9   : > { %p4129_p7 = pnand %p4127_p6, %p5272_p10 }
  0xba   : > { %p4136_p9 = por %p4135_p8, %p4134_p5 }
  0xbb   : > { %p4130_p11 = pneg %p4129_p7 }
  0xbc   : > { %3715 = dma.hbm_to_vmem [thread:$0]  (!%p5273_p12), %s5276_s12, 512, %s590_s1, [#allocation15], %s5271_s22, %s5271_s22, %s5270_s20  }
  0xbd   : > { %p4137_p0 = pnand %p4136_p9, %p4130_p11 }
  0xbf   : > { %4140 = shalt.err (!%p4137_p0)
}
  0xc0   : > { %s5277_s14 = sld [smem:[#allocation55_spill]]  ;;  %s4385_s1 = smov [#allocation22]  }
  0xc1   : > { %s637_s6 = sshll.u32 %s4385_s1, 4  ;;  %s4386_s15 = smov [#allocation23]   ;;  %s638_s6 = int_to_ptr.vmem [resolvable:$true] %s637_s6 }
  0xc2   : > { %s651_s9 = sshll.u32 %s4386_s15, 4  ;;  %s4152_s24 = scalar_lea.vmem %s638_s6, 512  ;;  %s652_s9 = int_to_ptr.vmem [resolvable:$true] %s651_s9 }
  0xc3   : > { %p4153_p1 = scmp.ne.s32.totalorder %s638_s6, %s4152_s24  ;;  %p4160_p6 = scmp.lt.s32.totalorder %s638_s6, %s638_s6 }
  0xc4   : > { %p4161_p7 = scmp.lt.s32.totalorder %s4152_s24, %s4152_s24 }
  0xc5   : > { %p4155_p2 = pnand %p4153_p1, %p5272_p10 }
  0xc6   : > { %3721 = dma.hbm_to_vmem [thread:$0]  (!%p5273_p12), %s5277_s14, 512, %s614_s11, [#allocation18], %s5271_s22, %s5271_s22, %s5270_s20  }
  0xc7   : > { %p4156_p3 = pneg %p4155_p2  ;;  %p4162_p11 = por %p4161_p7, %p4160_p6 }
  0xc9   : > { %p4163_p5 = pnand %p4162_p11, %p4156_p3 }
  0xcb   : > { %4166 = shalt.err (!%p4163_p5)
}
  0xcc   : > { %s5278_s16 = sld [smem:[#allocation57_spill]]  ;;  %s4178_s19 = scalar_lea.vmem %s652_s9, 16 }
  0xcd   : > { %p4179_p8 = scmp.ne.s32.totalorder %s652_s9, %s4178_s19  ;;  %s4185_s13 = scalar_lea.vmem %s652_s9, 32 }
  0xce   : > { %p4186_p1 = scmp.lt.s32.totalorder %s652_s9, %s652_s9  ;;  %p4187_p2 = scmp.lt.s32.totalorder %s4185_s13, %s4178_s19 }
  0xcf   : > { %p4181_p9 = pnand %p4179_p8, %p5272_p10 }
  0xd0   : > { %p4188_p3 = por %p4187_p2, %p4186_p1 }
  0xd1   : > { %p4182_p0 = pneg %p4181_p9 }
  0xd2   : > { %3727 = dma.hbm_to_vmem [thread:$0]  (!%p5273_p12), %s5278_s16, 512, %s638_s6, [#allocation21], %s5271_s22, %s5271_s22, %s5270_s20  }
  0xd3   : > { %p4189_p6 = pnand %p4188_p3, %p4182_p0 }
  0xd5   : > { %4192 = shalt.err (!%p4189_p6)
}
  0xd6   : > { %3730 = dma.hbm_to_vmem [thread:$0]  (!%p5273_p12), %s5205_s17, 16, %s652_s9, [#allocation24]  }
  0xd7   : > { %s5279_s28 = sshll.u32 %s4371_s21, 8  ;;  %s5280_s11 = sld [smem:[#allocation42_spill]] }
  0xd8   : > { %s5281_s19 = sshll.u32 %s4624_s5, 4  ;;  %s3315_s8 = sshll.u32 %s4624_s5, 3 }
  0xd9   : > { %s666_s3 = scalar_lea.vmem [#allocation2], %s5281_s19  ;;  %s663_s1 = scalar_lea.sflag [#allocation3], %s4624_s5 }
  0xda   : > { %s673_s13 = sshll.u32 %s666_s3, 4  ;;  %s4747_s13 = int_to_ptr.vmem [resolvable:$true] %s673_s13 }
  0xdd   : > { %s4742_s25 = scalar_lea.hbm %s5280_s11, %s5279_s28  ;;  %s4198_s28 = scalar_lea.hbm %s5280_s11, 512 }
  0xde   : > { %s4193_s15 = scalar_lea.hbm %s4742_s25, 256  ;;  %p4199_p11 = scmp.lt.s32.totalorder %s4742_s25, %s5280_s11 }
  0xdf   : > { %p4194_p10 = scmp.ne.s32.totalorder %s4742_s25, %s4193_s15  ;;  %p4200_p5 = scmp.lt.s32.totalorder %s4198_s28, %s4193_s15 }
  0xe1   : > { %p4196_p12 = pnand %p4194_p10, %p4654_p13  ;;  %p4201_p8 = por %p4200_p5, %p4199_p11 }
  0xe3   : > { %p4197_p7 = pneg %p4196_p12 }
  0xe5   : > { %p4202_p9 = pnand %p4201_p8, %p4197_p7 }
  0xe7   : > { %4205 = shalt.err (!%p4202_p9)
}
  0xe8   : > { %s4206_s19 = scalar_lea.vmem %s4747_s13, 256  ;;  %s4387_s3 = smov [#allocation2]  }
  0xe9   : > { %p4207_p0 = scmp.ne.s32.totalorder %s4747_s13, %s4206_s19  ;;  %s4211_s10 = sshll.u32 %s4387_s3, 4  ;;  %s4212_s10 = int_to_ptr.vmem [resolvable:$false] %s4211_s10 }
  0xea   : > { %s4213_s9 = scalar_lea.vmem %s4212_s10, 512  ;;  %p4214_p3 = scmp.lt.s32.totalorder %s4747_s13, %s4212_s10 }
  0xeb   : > { %p4209_p1 = pnand %p4207_p0, %p4654_p13  ;;  %p4215_p6 = scmp.lt.s32.totalorder %s4213_s9, %s4206_s19 }
  0xed   : > { %p4210_p2 = pneg %p4209_p1  ;;  %p4216_p10 = por %p4215_p6, %p4214_p3 }
  0xef   : > { %p4217_p12 = pnand %p4216_p10, %p4210_p2 }
  0xf1   : > { %4220 = shalt.err (!%p4217_p12)
}
  0xf2   : > { %3734 = dma.hbm_to_vmem [thread:$0]  (!%p4632_p4), %s4742_s25, 256, %s4747_s13, %s663_s1, %s5271_s22, %s5271_s22, %s5270_s20  }
  0xf3   : > { %s3316_s15 = sshll.u32 %s4371_s21, 7  ;;  %s716_s28 = scalar_lea.vmem [#allocation7], %s3315_s8 }
  0xf4   : > { %s723_s6 = sshll.u32 %s716_s28, 4  ;;  %s5282_s3 = sld [smem:[#allocation45_spill]]  ;;  %s724_s6 = int_to_ptr.vmem [resolvable:$true] %s723_s6 }
  0xfa   : > { %s721_s10 = scalar_lea.hbm %s5282_s3, %s3316_s15  ;;  %s4226_s14 = scalar_lea.hbm %s5282_s3, 256 }
  0xfb   : > { %s4221_s9 = scalar_lea.hbm %s721_s10, 128  ;;  %p4227_p8 = scmp.lt.s32.totalorder %s721_s10, %s5282_s3 }
  0xfc   : > { %p4222_p7 = scmp.ne.s32.totalorder %s721_s10, %s4221_s9  ;;  %p4228_p9 = scmp.lt.s32.totalorder %s4226_s14, %s4221_s9 }
  0xfe   : > { %p4224_p11 = pnand %p4222_p7, %p4654_p13  ;;  %p4229_p0 = por %p4228_p9, %p4227_p8 }
 0x100   : > { %p4225_p5 = pneg %p4224_p11 }
 0x102   : > { %p4230_p1 = pnand %p4229_p0, %p4225_p5 }
 0x104   : > { %4233 = shalt.err (!%p4230_p1)
}
 0x105   : > { %s4234_s8 = scalar_lea.vmem %s724_s6, 128  ;;  %s4388_s5 = smov [#allocation7]  }
 0x106   : > { %p4235_p2 = scmp.ne.s32.totalorder %s724_s6, %s4234_s8  ;;  %s4239_s22 = sshll.u32 %s4388_s5, 4  ;;  %s4240_s22 = int_to_ptr.vmem [resolvable:$false] %s4239_s22 }
 0x107   : > { %s4241_s25 = scalar_lea.vmem %s4240_s22, 256  ;;  %p4242_p10 = scmp.lt.s32.totalorder %s724_s6, %s4240_s22 }
 0x108   : > { %p4237_p3 = pnand %p4235_p2, %p4654_p13  ;;  %p4243_p12 = scmp.lt.s32.totalorder %s4241_s25, %s4234_s8 }
 0x10a   : > { %p4238_p6 = pneg %p4237_p3  ;;  %p4244_p7 = por %p4243_p12, %p4242_p10 }
 0x10c   : > { %p4245_p11 = pnand %p4244_p7, %p4238_p6 }
 0x10e   : > { %4248 = shalt.err (!%p4245_p11)
}
 0x10f   : > { %3740 = dma.hbm_to_vmem [thread:$0]  (!%p4632_p4), %s721_s10, 128, %s724_s6, %s4648_s27  }
 0x110   : > { %p5283_p5 = scmp.ne.s32.totalorder %s5252_s23, 0 }
 0x111   : > { %s4795_s12 = sand.u32 (!%p5283_p5), 1, %s4363_s30   ;;  %p5284_p13 = scmp.ne.s32.totalorder (!%p5283_p5), %s5263_s29, 0 }
 0x112   : > { %744 = sbr.rel (%p5283_p5) target bundleno = 4274 (0x10b2), region = 92  ;;  %s4798_s14 = sshll.u32 (!%p5283_p5), %s4795_s12, 4 }
 0x113   : > { %s747_s16 = scalar_lea.sflag (!%p5283_p5), [#allocation3], %s4795_s12  ;;  %s750_s26 = scalar_lea.vmem (!%p5283_p5), [#allocation2], %s4798_s14 }
 0x117   : > { %4318 = dma.done.wait (%p5284_p13), %s747_s16, 256  }
 0x118   : > { %4320 = vsyncadd (%p5284_p13), %s747_s16, 4294967040  ;;  %s755_s23 = sand.u32 1, %s4526_s2   ;;  %s759_s18 = scalar_lea.vmem [#allocation5], %s4798_s14 }
 0x119   : > { %s756_s27 = scalar_lea.sflag [#allocation6], %s755_s23 }
 0x11a   : > { %4322 = dma.done.wait (%p5284_p13), %s756_s27, 384  }
 0x11b   : > { %4324 = vsyncadd (%p5284_p13), %s756_s27, 4294966912  ;;  %s3320_s11 = sshll.u32 %s4795_s12, 3  ;;  %p5285_p4 = scmp.eq.s32.totalorder %s4526_s2, 0 }
 0x11c   : > { %s4815_s13 = scalar_lea.vmem [#allocation7], %s3320_s11 }
 0x11d   : > { %4326 = dma.done.wait (%p5285_p4), [#allocation9], 1024   ;;  %p5286_p8 = pmov %p5285_p4 }
 0x11e   : > { %p5287_p9 = pmov %p5285_p4 }
 0x11f   : > { %4328 = vsyncadd (%p5286_p8), [#allocation9], 4294966272 }
 0x120   : > { %4330 = dma.done.wait (%p5287_p9), [#allocation12], 528   ;;  %p5288_p0 = pmov %p5285_p4 }
 0x122   : > { %4332 = vsyncadd (%p5288_p0), [#allocation12], 4294966768  ;;  %p5289_p1 = pmov %p5288_p0 }
 0x123   : > { %p5290_p2 = pmov %p5288_p0 }
 0x124   : > { %4334 = dma.done.wait (%p5289_p1), [#allocation15], 528  }
 0x125   : > { %4336 = vsyncadd (%p5290_p2), [#allocation15], 4294966768  ;;  %p5291_p3 = pmov %p5288_p0 }
 0x126   : > { %p5292_p6 = pmov %p5288_p0 }
 0x127   : > { %4338 = dma.done.wait (%p5291_p3), [#allocation18], 528  }
 0x128   : > { %4340 = vsyncadd (%p5292_p6), [#allocation18], 4294966768  ;;  %p5293_p10 = pmov %p5288_p0 }
 0x129   : > { %p5294_p12 = pmov %p5288_p0 }
 0x12a   : > { %4342 = dma.done.wait (%p5293_p10), [#allocation21], 528  }
 0x12b   : > { %4344 = vsyncadd (%p5294_p12), [#allocation21], 4294966768  ;;  %p5295_p7 = pmov %p5288_p0 }
 0x12c   : > { %p5296_p11 = pmov %p5288_p0 }
 0x12d   : > { %4346 = dma.done.wait (%p5295_p7), [#allocation24], 16  }
 0x12e   : > { %4348 = vsyncadd (%p5296_p11), [#allocation24], 4294967280  ;;  %p893_p5 = scmp.lt.s32.totalorder %s4526_s2, 1  ;;  %v4389_v0 = vmov 0.0   ;;  %vm4390_vm0 = vmmov 0   ;;  %s5297_s6 = sld [smem:[#allocation43_spill]]  ;;  %v1265_v22 = vlaneseq }
 0x12f   : > { %3481 = vmatprep.subr.mxu0 %v4389_v0  ;;  %3489 = vmatprep.mubr.msk.f32.mxu0 %vm4390_vm0, %v4389_v0  ;;  %v1001_v1 = vld [vmem:[#allocation10 + $0x18] sm:$0xff]  ;;  %v1000_v2 = vld [vmem:[#allocation10 + $0x10] sm:$0xff]  ;;  %v999_v5 = vld [vmem:[#allocation10 + $0x8] sm:$0xff]  ;;  %vm924_vm1 = vcmask 261120   ;;  %vm1183_vm2 = vcmask 64512   ;;  %s4391_s9 = smov 120  }
 0x130   : > { %s4846_s29 = scalar_select %p893_p5, %s4526_s2, 1  ;;  %v916_v3 = vld [vmem:[#allocation8 + $0x18] sm:$0xff]  ;;  %3492 = vmatprep.subr.mxu1 %v1001_v1  ;;  %v915_v4 = vld [vmem:[#allocation8 + $0x10] sm:$0xff]  ;;  %v914_v7 = vld [vmem:[#allocation8 + $0x8] sm:$0xff]  ;;  %v1266_v23 = vshrl.u32 %v1265_v22, 7  ;;  %v4392_v26 = vmov 0  }
 0x131   : > { %3482 = vmatpush3.msra.mxu0 %v916_v3  ;;  %3493 = vmatpush3.msra.mxu1 %v1001_v1  ;;  %v998_v8 = vld [vmem:[#allocation10] sm:$0xff]  ;;  %v910_v11 = vld [vmem:[%s4815_s13] sm:$0xff]  ;;  %s5298_s5 = sld [smem:[#allocation47_spill]]  ;;  %v909_v34 = vld [vmem:[%s759_s18 + $0x8] sm:$0xff]  ;;  %vm1271_vm6 = vcmask 130048   ;;  %s4394_s13 = smov 104  }
 0x132   : > { %s3397_s1 = sshll.u32 %s4846_s29, 4  ;;  %3483 = vmatprep.subr.mxu0 %v4389_v0  ;;  %3494 = vmatprep.subr.mxu1 %v1000_v2  ;;  %v913_v9 = vld [vmem:[#allocation8] sm:$0xff]  ;;  %v3336_v13 = vld [vmem:[%s5195_s7] ss:$0 sm:$0xff]  ;;  %v1267_v25 = vsub.s32 0, %v1266_v23  ;;  %v1092_v30 = vld [vmem:[#allocation13 + $0x10] sm:$0xff] }
 0x133   : > { %3484 = vmatpush3.msra.mxu0 %v915_v4  ;;  %3495 = vmatpush3.msra.mxu1 %v1000_v2  ;;  %v3338_v12 = vld [vmem:[#allocation11] ss:$0 sm:$0xff]  ;;  %v1091_v32 = vld [vmem:[#allocation13 + $0x8] sm:$0xff]  ;;  %v1090_v33 = vld [vmem:[#allocation13] sm:$0xff]  ;;  %s5299_s23 = sld [smem:[#allocation46_spill]]  ;;  %s4397_s15 = smov 24  }
 0x134   : > { %s897_s24 = scalar_lea.vmem %s5297_s6, %s3397_s1  ;;  %3485 = vmatprep.subr.mxu0 %v4389_v0  ;;  %3496 = vmatprep.subr.mxu1 %v999_v5  ;;  %v1093_v29 = vld [vmem:[#allocation13 + $0x18] sm:$0xff]  ;;  %v3341_v48 = vld [vmem:[#allocation14] ss:$0 sm:$0xff]  ;;  %s4396_s1 = smov 16   ;;  %vm1891_vm7 = vcmask 195584  }
 0x135   : > { %v906_v6 = vld [vmem:[%s897_s24] sm:$0xff]  ;;  %3497 = vmatpush3.msra.mxu1 %v999_v5  ;;  %v907_v10 = vld [vmem:[%s897_s24 + $0x8] sm:$0xff]  ;;  %3486 = vmatpush3.msra.mxu0 %v914_v7  ;;  %s4399_s28 = smov 80   ;;  %s4400_s6 = smov 88  }
 0x136   : > { %3500 = vmatprep.mubr.msk.f32.mxu1 %vm924_vm1, %v906_v6  ;;  %3498 = vmatprep.subr.mxu1 %v998_v8  ;;  %v908_v31 = vld [vmem:[%s759_s18] sm:$0xff]  ;;  %s4393_s18 = smov 112   ;;  %s4401_s24 = smov 72  }
 0x137   : > { %3487 = vmatprep.subr.mxu0 %v4389_v0  ;;  %3499 = vmatpush3.msra.mxu1 %v998_v8  ;;  %s903_s22 = scalar_lea.vmem %s5298_s5, %s4846_s29  ;;  %s3390_s19 = sshll.u32 %s4526_s2, 7 }
 0x138   : > { %3488 = vmatpush3.msra.mxu0 %v913_v9  ;;  %3501 = vmatmul.mubr.msk.f32.vlgmr.msra.gmra.mxu1 %vm924_vm1, %v907_v10  ;;  %v912_v24 = vld [vmem:[%s903_s22] sm:$0x1]  ;;  %s5300_s20 = sld [smem:[#allocation58_spill]]  ;;  %s2981_s25 = scalar_lea.sflag [#allocation4], %s4795_s12 }
 0x139   : > { %3490 = vmatmul.mubr.msk.f32.vlgmr.msra.gmra.mxu0 %vm924_vm1, %v910_v11  ;;  %3514 = vmatprep.subr.mxu1 %v4389_v0  ;;  %vm2156_vm3 = vcmp.gt.f32.partialorder %v912_v24, 0.5  ;;  %s900_s27 = scalar_lea.vmem %s5299_s23, %s4846_s29  ;;  %s4395_s29 = smov 8  }
 0x13a   : > { %3518 = vmatprep.mubr.msk.f32.mxu1 %vm4390_vm0, %v4389_v0  ;;  %v2157_v27 = vsel %vm2156_vm3, 1, %v4392_v26  ;;  %3503 = vmatprep.subr.mxu0 %v1093_v29  ;;  %v911_v35 = vld [vmem:[%s900_s27] sm:$0x1]  ;;  %p5302_p4 = scmp.ne.s32.totalorder %s5264_s4, 0  ;;  %s4402_s23 = smov [#allocation25]  }
 0x13b   : > { %v4889_v28 = vrot.slane %v2157_v27, %v1267_v25  ;;  %3504 = vmatpush3.msra.mxu0 %v1093_v29  ;;  %3511 = vmatprep.mubr.msk.f32.mxu0 %vm924_vm1, %v908_v31  ;;  %vm1263_vm4 = vcmp.gt.f32.partialorder %v911_v35, 0.5  ;;  %s4253_s27 = sshll.u32 %s4402_s23, 4  ;;  %s4254_s27 = int_to_ptr.vmem [resolvable:$false] %s4253_s27 }
 0x13c   : > { %3505 = vmatprep.subr.mxu0 %v1092_v30  ;;  %v1264_v36 = vsel %vm1263_vm4, 1, %v4392_v26 }
 0x13d   : > { %3506 = vmatpush3.msra.mxu0 %v1092_v30  ;;  %v4904_v37 = vrot.slane %v1264_v36, %v1267_v25  ;;  %vm2162_vm8 = vcmp.eq.s32.totalorder %v4889_v28, 1 }
 0x13e   : > { %3507 = vmatprep.subr.mxu0 %v1091_v32  ;;  %s5301_s8 = smov %s5300_s20  ;;  %s2997_s5 = scalar_lea.hbm %s5300_s20, %s3390_s19 }
 0x13f   : > { %3508 = vmatpush3.msra.mxu0 %v1091_v32  ;;  %vm1269_vm5 = vcmp.eq.s32.totalorder %v4904_v37, 1 }
 0x140   : > { %3509 = vmatprep.subr.mxu0 %v1090_v33 }
 0x141   : > { %3510 = vmatpush3.msra.mxu0 %v1090_v33 }
 0x142   : > { %3512 = vmatmul.mubr.msk.f32.vlgmr.msra.gmra.mxu0 %vm924_vm1, %v909_v34  ;;  %3535 = vmatprep.subr.mxu0 %v4389_v0 }
 0x143   : > { %3539 = vmatprep.mubr.msk.f32.mxu0 %vm4390_vm0, %v4389_v0 }
 0x1f8   : > { %v3502_v14 = vpop.f32.mrf.mxu1 }
 0x1f9   : > { %v994_v15 = vpop.f32.mrf.mxu0  ;;  %v4865_v16 = vadd.f32 %v3502_v14, %v3338_v12 }
 0x1fa   : > { %v1081_v17 = vpop.f32.mrf.mxu1  ;;  %v995_v18 = vadd.f32 %v3336_v13, %v994_v15 }
 0x1fb   : > { %v3491_v19 = vpop.f32.mrf.mxu0  ;;  %1360 = vrot.lane.b32.xlu1 %v4865_v16, %s4391_s9  ;;  %3515 = vmatpush3.xpose.msk.msra.mxu1 %vm1183_vm2, %v4865_v16  ;;  %v4872_v20 = vadd.f32 %v3338_v12, %v1081_v17 }
 0x1fc   : > { %3516 = vmatprep.subr.mxu1 %v4389_v0  ;;  %v4874_v21 = vmul.f32 0.35355338, %v995_v18 }
 0x1ff   : > { %1358 = vrot.lane.b32.xlu1 %v4872_v20, %s4391_s9  ;;  %3517 = vmatpush3.xpose.msk.msra.mxu1 %vm1183_vm2, %v4872_v20 }
 0x200   : > { %3521 = vmatprep.subr.mxu1 %v4389_v0 }
 0x202   : > { %3519 = vmatmul.mubr.msk.f32.vlgmr.msra.gmra.mxu1 %vm1183_vm2, %v4874_v21  ;;  %v3513_v47 = vpop.f32.mrf.mxu0 }
 0x203   : > { %3525 = vmatprep.mubr.msk.f32.mxu1 %vm4390_vm0, %v4389_v0  ;;  %v4911_v49 = vadd.f32 %v3513_v47, %v3341_v48 }
 0x204   : > { %v1173_v50 = vpop.f32.mrf.mxu0 }
 0x205   : > { %v4913_v51 = vadd.f32 %v3341_v48, %v1173_v50  ;;  %3522 = vmatpush3.msra.mxu1 %v4911_v49  ;;  %v1897_v50 = vld [vmem:[#allocation16 + $0x18] sm:$0xff] }
 0x206   : > { %3523 = vmatprep.subr.mxu1 %v4389_v0 }
 0x207   : > { %3524 = vmatpush3.msra.mxu1 %v4913_v51 }
 0x208   : > { %3528 = vmatprep.subr.mxu1 %v4389_v0 }
 0x26d   : > { %v1361_v54 = vpop.permute.xlu1 %1360 }
 0x271   : > { %v1359_v56 = vpop.permute.xlu1 %1358 }
 0x2c2   : > { %v1259_v38 = vpop.f32.mrf.mxu1 }
 0x2c3   : > { %v1270_v39 = vsel %vm1269_vm5, -10000.0, %v1259_v38 }
 0x2c4   : > { %v3520_v40 = vpop.f32.mrf.mxu1  ;;  %v1272_v41 = vsel %vm1271_vm6, %v1270_v39, -inf }
 0x2c5   : > { %1273 = vmax.xlane.f32.xlu0 %v1272_v41 }
 0x34e   : > { %v1274_v42 = vpop.xlane.xlu0 %1273 }
 0x34f   : > { %v1275_v43 = vsub.f32 %v1270_v39, %v1274_v42 }
 0x351   : > { %v1276_v44 = vmul.f32 1.442695, %v1275_v43 }
 0x353   : > { %3831 = vpow2.f32 %v1276_v44 }
 0x360   : > { %v3832_v45 = vpop.eup %3831 }
 0x361   : > { %v1278_v46 = vsel %vm1271_vm6, %v3832_v45, 0.0 }
 0x362   : > { %1279 = vadd.xlane.f32.xlu0 %v1278_v46 }
 0x378   : > { %1356 = vrot.lane.b32.xlu0 %v4874_v21, %s4391_s9 }
 0x3eb   : > { %v1280_v52 = vpop.xlane.xlu0 %1279 }
 0x3ec   : > { %3833 = vrcp.f32 %v1280_v52  ;;  %v1896_v52 = vld [vmem:[#allocation16 + $0x10] sm:$0xff] }
 0x3ef   : > { %v1357_v57 = vpop.permute.xlu0 %1356 }
 0x3f9   : > { %v3834_v53 = vpop.eup %3833 }
 0x3fa   : > { %v1282_v55 = vmul.f32 %v3834_v53, %v3832_v45  ;;  %v904_v53 = vld [vmem:[%s750_s26] sm:$0xff] }
 0x3fc   : > { %3526 = vmatmul.mubr.msk.f32.vlgmr.msra.gmra.mxu1 %vm1271_vm6, %v1282_v55  ;;  %v1988_v55 = vld [vmem:[#allocation19 + $0x10] sm:$0xff] }
 0x3fd   : > { %3529 = vmatpush3.xpose.msk.msra.mxu1 %vm1183_vm2, %v1361_v54  ;;  %3532 = vmatprep.mubr.msk.f32.mxu1 %vm4390_vm0, %v4389_v0  ;;  %v1895_v54 = vld [vmem:[#allocation16 + $0x8] sm:$0xff] }
 0x3fe   : > { %3530 = vmatprep.subr.mxu1 %v4389_v0 }
 0x401   : > { %3531 = vmatpush3.xpose.msk.msra.mxu1 %vm1183_vm2, %v1359_v56  ;;  %v1894_v56 = vld [vmem:[#allocation16] sm:$0xff] }
 0x402   : > { %3549 = vmatprep.subr.mxu1 %v4389_v0 }
 0x404   : > { %3533 = vmatmul.mubr.msk.f32.vlgmr.msra.gmra.mxu1 %vm1183_vm2, %v1357_v57  ;;  %v1987_v57 = vld [vmem:[#allocation19 + $0x8] sm:$0xff] }
 0x405   : > { %3553 = vmatprep.mubr.msk.f32.mxu1 %vm4390_vm0, %v4389_v0 }
 0x4bc   : > { %v4931_v58 = vpop.f32.mrf.mxu1 }
 0x4be   : > { %v3527_v59 = vpop.f32.mrf.mxu1 }
 0x4bf   : > { %v905_v59 = vld [vmem:[%s750_s26 + $0x8] sm:$0xff]  ;;  %s5017_s26 = scalar_lea.vmem [#allocation25], %s3320_s11  ;;  %s4398_s11 = smov 96  }
 0x4c0   : > { %s2999_s22 = sshll.u32 %s5017_s26, 4  ;;  %s3000_s22 = int_to_ptr.vmem [resolvable:$true] %s2999_s22 }
 0x4c1   : > { %s4249_s16 = scalar_lea.vmem %s3000_s22, 128  ;;  %p4256_p0 = scmp.lt.s32.totalorder %s3000_s22, %s4254_s27 }
 0x4c2   : > { %p4250_p13 = scmp.ne.s32.totalorder %s3000_s22, %s4249_s16 }
 0x4c4   : > { %v1434_v60 = vpop.f32.mrf.mxu1  ;;  %p4251_p8 = pnand %p4250_p13, %p5302_p4 }
 0x4c5   : > { %v1438_v61 = vsel %vm1269_vm5, -10000.0, %v1434_v60  ;;  %v1986_v60 = vld [vmem:[#allocation19] sm:$0xff] }
 0x4c6   : > { %v3534_v62 = vpop.f32.mrf.mxu1  ;;  %v1439_v63 = vsel %vm1271_vm6, %v1438_v61, -inf  ;;  %p4252_p9 = pneg %p4251_p8 }
 0x4c7   : > { %1440 = vmax.xlane.f32.xlu1 %v1439_v63  ;;  %v3360_v63 = vld [vmem:[#allocation17] ss:$0 sm:$0xff] }
 0x4d8   : > { %1454 = vrot.lane.b32.xlu1 %v4911_v49, %s4391_s9 }
 0x4dc   : > { %1535 = vrot.lane.b32.xlu1 %v4865_v16, %s4393_s18 }
 0x4e0   : > { %1533 = vrot.lane.b32.xlu1 %v4872_v20, %s4393_s18 }
 0x4e4   : > { %1531 = vrot.lane.b32.xlu1 %v4874_v21, %s4393_s18 }
 0x550   : > { %v1441_v1 = vpop.xlane.xlu1 %1440 }
 0x551   : > { %v1442_v2 = vsub.f32 %v1438_v61, %v1441_v1 }
 0x553   : > { %v1443_v3 = vmul.f32 1.442695, %v1442_v2 }
 0x554   : > { %v1455_v4 = vpop.permute.xlu1 %1454 }
 0x555   : > { %3835 = vpow2.f32 %v1443_v3  ;;  %3536 = vmatpush3.msra.mxu0 %v1455_v4 }
 0x556   : > { %3537 = vmatprep.subr.mxu0 %v4389_v0 }
 0x558   : > { %v1536_v9 = vpop.permute.xlu1 %1535 }
 0x55c   : > { %v1534_v12 = vpop.permute.xlu1 %1533 }
 0x560   : > { %v1532_v13 = vpop.permute.xlu1 %1531 }
 0x562   : > { %v3836_v5 = vpop.eup %3835 }
 0x563   : > { %v1445_v6 = vsel %vm1271_vm6, %v3836_v5, 0.0 }
 0x564   : > { %1446 = vadd.xlane.f32.xlu0 %v1445_v6 }
 0x57a   : > { %1452 = vrot.lane.b32.xlu0 %v4913_v51, %s4391_s9 }
 0x5ed   : > { %v1447_v7 = vpop.xlane.xlu0 %1446 }
 0x5ee   : > { %3837 = vrcp.f32 %v1447_v7 }
 0x5f1   : > { %v1453_v8 = vpop.permute.xlu0 %1452 }
 0x5f2   : > { %3538 = vmatpush3.msra.mxu0 %v1453_v8 }
 0x5f3   : > { %3542 = vmatprep.subr.mxu0 %v4389_v0 }
 0x5fb   : > { %v3838_v10 = vpop.eup %3837 }
 0x5fc   : > { %v1449_v11 = vmul.f32 %v3838_v10, %v3836_v5 }
 0x5fe   : > { %3540 = vmatmul.mubr.msk.f32.vlgmr.msra.gmra.mxu0 %vm1271_vm6, %v1449_v11 }
 0x5ff   : > { %3543 = vmatpush3.xpose.msk.msra.mxu0 %vm1183_vm2, %v1536_v9  ;;  %3546 = vmatprep.mubr.msk.f32.mxu0 %vm4390_vm0, %v4389_v0 }
 0x600   : > { %3544 = vmatprep.subr.mxu0 %v4389_v0 }
 0x603   : > { %3545 = vmatpush3.xpose.msk.msra.mxu0 %vm1183_vm2, %v1534_v12  ;;  %v3363_v12 = vld [vmem:[#allocation20] ss:$0 sm:$0xff] }
 0x604   : > { %3563 = vmatprep.subr.mxu0 %v4389_v0 }
 0x606   : > { %3547 = vmatmul.mubr.msk.f32.vlgmr.msra.gmra.mxu0 %vm1183_vm2, %v1532_v13 }
 0x607   : > { %3567 = vmatprep.mubr.msk.f32.mxu0 %vm4390_vm0, %v4389_v0 }
 0x6be   : > { %v1527_v14 = vpop.f32.mrf.mxu0 }
 0x6c0   : > { %v3541_v15 = vpop.f32.mrf.mxu0 }
 0x6c6   : > { %v1609_v17 = vpop.f32.mrf.mxu0 }
 0x6c7   : > { %v1613_v18 = vsel %vm1269_vm5, -10000.0, %v1609_v17 }
 0x6c8   : > { %v3548_v19 = vpop.f32.mrf.mxu0  ;;  %v1614_v22 = vsel %vm1271_vm6, %v1613_v18, -inf }
 0x6c9   : > { %1615 = vmax.xlane.f32.xlu1 %v1614_v22 }
 0x6da   : > { %1627 = vrot.lane.b32.xlu1 %v4911_v49, %s4393_s18 }
 0x6de   : > { %1708 = vrot.lane.b32.xlu1 %v4865_v16, %s4394_s13 }
 0x6e2   : > { %1706 = vrot.lane.b32.xlu1 %v4872_v20, %s4394_s13 }
 0x6e6   : > { %1704 = vrot.lane.b32.xlu1 %v4874_v21, %s4394_s13 }
 0x752   : > { %v1616_v23 = vpop.xlane.xlu1 %1615 }
 0x753   : > { %v1617_v24 = vsub.f32 %v1613_v18, %v1616_v23 }
 0x755   : > { %v1618_v25 = vmul.f32 1.442695, %v1617_v24 }
 0x756   : > { %v1628_v26 = vpop.permute.xlu1 %1627 }
 0x757   : > { %3839 = vpow2.f32 %v1618_v25  ;;  %3550 = vmatpush3.msra.mxu1 %v1628_v26 }
 0x758   : > { %3551 = vmatprep.subr.mxu1 %v4389_v0 }
 0x75a   : > { %v1709_v21 = vpop.permute.xlu1 %1708 }
 0x75e   : > { %v1707_v32 = vpop.permute.xlu1 %1706 }
 0x762   : > { %v1705_v33 = vpop.permute.xlu1 %1704 }
 0x764   : > { %v3840_v27 = vpop.eup %3839 }
 0x765   : > { %v1620_v29 = vsel %vm1271_vm6, %v3840_v27, 0.0 }
 0x766   : > { %1621 = vadd.xlane.f32.xlu0 %v1620_v29 }
 0x77c   : > { %1625 = vrot.lane.b32.xlu0 %v4913_v51, %s4393_s18 }
 0x7ef   : > { %v1622_v16 = vpop.xlane.xlu0 %1621 }
 0x7f0   : > { %3841 = vrcp.f32 %v1622_v16 }
 0x7f3   : > { %v1626_v20 = vpop.permute.xlu0 %1625 }
 0x7f4   : > { %3552 = vmatpush3.msra.mxu1 %v1626_v20 }
 0x7f5   : > { %3556 = vmatprep.subr.mxu1 %v4389_v0 }
 0x7fd   : > { %v3842_v30 = vpop.eup %3841 }
 0x7fe   : > { %v1624_v31 = vmul.f32 %v3842_v30, %v3840_v27 }
 0x800   : > { %3554 = vmatmul.mubr.msk.f32.vlgmr.msra.gmra.mxu1 %vm1271_vm6, %v1624_v31 }
 0x801   : > { %3557 = vmatpush3.xpose.msk.msra.mxu1 %vm1183_vm2, %v1709_v21  ;;  %3560 = vmatprep.mubr.msk.f32.mxu1 %vm4390_vm0, %v4389_v0 }
 0x802   : > { %3558 = vmatprep.subr.mxu1 %v4389_v0 }
 0x805   : > { %3559 = vmatpush3.xpose.msk.msra.mxu1 %vm1183_vm2, %v1707_v32 }
 0x806   : > { %3581 = vmatprep.subr.mxu1 %v4389_v0 }
 0x808   : > { %3561 = vmatmul.mubr.msk.f32.vlgmr.msra.gmra.mxu1 %vm1183_vm2, %v1705_v33 }
 0x809   : > { %3589 = vmatprep.mubr.msk.f32.mxu1 %vm4390_vm0, %v4389_v0 }
 0x8c0   : > { %v1700_v34 = vpop.f32.mrf.mxu1 }
 0x8c2   : > { %v3555_v35 = vpop.f32.mrf.mxu1 }
 0x8c8   : > { %v1782_v36 = vpop.f32.mrf.mxu1 }
 0x8c9   : > { %v1786_v38 = vsel %vm1269_vm5, -10000.0, %v1782_v36 }
 0x8ca   : > { %v3562_v39 = vpop.f32.mrf.mxu1  ;;  %v1787_v40 = vsel %vm1271_vm6, %v1786_v38, -inf }
 0x8cb   : > { %1788 = vmax.xlane.f32.xlu0 %v1787_v40 }
 0x8e1   : > { %1800 = vrot.lane.b32.xlu0 %v4911_v49, %s4394_s13 }
 0x8e5   : > { %1878 = vrot.lane.b32.xlu0 %v1527_v14, %s4395_s29 }
 0x954   : > { %v1789_v41 = vpop.xlane.xlu0 %1788 }
 0x955   : > { %v1790_v42 = vsub.f32 %v1786_v38, %v1789_v41 }
 0x957   : > { %v1791_v43 = vmul.f32 1.442695, %v1790_v42 }
 0x958   : > { %v1801_v44 = vpop.permute.xlu0 %1800 }
 0x959   : > { %3843 = vpow2.f32 %v1791_v43  ;;  %3564 = vmatpush3.msra.mxu0 %v1801_v44 }
 0x95a   : > { %3565 = vmatprep.subr.mxu0 %v4389_v0 }
 0x966   : > { %v3844_v37 = vpop.eup %3843 }
 0x967   : > { %v1793_v45 = vsel %vm1271_vm6, %v3844_v37, 0.0 }
 0x968   : > { %1794 = vadd.xlane.f32.xlu1 %v1793_v45 }
 0x979   : > { %1798 = vrot.lane.b32.xlu1 %v4913_v51, %s4394_s13  ;;  %v1989_v51 = vld [vmem:[#allocation19 + $0x18] sm:$0xff] }
 0x97a   : > { %3582 = vmatpush3.msra.mxu1 %v1989_v51 }
 0x97b   : > { %3583 = vmatprep.subr.mxu1 %v4389_v0 }
 0x97c   : > { %3584 = vmatpush3.msra.mxu1 %v1988_v55 }
 0x97d   : > { %1882 = vrot.lane.b32.xlu1 %v1700_v34, %s4396_s1  ;;  %3585 = vmatprep.subr.mxu1 %v4389_v0 }
 0x97e   : > { %3586 = vmatpush3.msra.mxu1 %v1987_v57 }
 0x97f   : > { %3587 = vmatprep.subr.mxu1 %v4389_v0  ;;  %v1879_v0 = vpop.permute.xlu0 %1878 }
 0x980   : > { %3588 = vmatpush3.msra.mxu1 %v1986_v60  ;;  %v1889_v8 = vsel %vm1183_vm2, %v4931_v58, %v1879_v0 }
 0x9f1   : > { %v1795_v46 = vpop.xlane.xlu1 %1794 }
 0x9f2   : > { %3845 = vrcp.f32 %v1795_v46 }
 0x9f5   : > { %v1799_v47 = vpop.permute.xlu1 %1798 }
 0x9f6   : > { %3566 = vmatpush3.msra.mxu0 %v1799_v47 }
 0x9f7   : > { %3570 = vmatprep.subr.mxu0 %v1897_v50 }
 0x9f9   : > { %v1883_v7 = vpop.permute.xlu1 %1882 }
 0x9fa   : > { %v1890_v9 = vsel %vm1271_vm6, %v1889_v8, %v1883_v7 }
 0x9ff   : > { %v3846_v48 = vpop.eup %3845 }
 0xa00   : > { %v1797_v49 = vmul.f32 %v3846_v48, %v3844_v37 }
 0xa02   : > { %3568 = vmatmul.mubr.msk.f32.vlgmr.msra.gmra.mxu0 %vm1271_vm6, %v1797_v49 }
 0xa03   : > { %3571 = vmatpush3.msra.mxu0 %v1897_v50  ;;  %3578 = vmatprep.mubr.msk.f32.mxu0 %vm924_vm1, %v904_v53 }
 0xa04   : > { %3572 = vmatprep.subr.mxu0 %v1896_v52 }
 0xa05   : > { %3573 = vmatpush3.msra.mxu0 %v1896_v52 }
 0xa06   : > { %3574 = vmatprep.subr.mxu0 %v1895_v54 }
 0xa07   : > { %3575 = vmatpush3.msra.mxu0 %v1895_v54 }
 0xa08   : > { %3576 = vmatprep.subr.mxu0 %v1894_v56 }
 0xa09   : > { %3577 = vmatpush3.msra.mxu0 %v1894_v56 }
 0xa0a   : > { %3579 = vmatmul.mubr.msk.f32.vlgmr.msra.gmra.mxu0 %vm924_vm1, %v905_v59 }
 0xac2   : > { %v1873_v61 = vpop.f32.mrf.mxu0 }
 0xac3   : > { %1886 = vrot.lane.b32.xlu0 %v1873_v61, %s4397_s15 }
 0xac4   : > { %v3569_v62 = vpop.f32.mrf.mxu0 }
 0xaca   : > { %v3580_v1 = vpop.f32.mrf.mxu0 }
 0xacb   : > { %v1983_v2 = vadd.f32 %v3580_v1, %v3360_v63 }
 0xacc   : > { %v1977_v3 = vpop.f32.mrf.mxu0 }
 0xacd   : > { %v2071_v4 = vmul.f32 0.35355338, %v1983_v2  ;;  %v1978_v5 = vadd.f32 %v3360_v63, %v1977_v3 }
 0xacf   : > { %v2070_v6 = vmul.f32 0.35355338, %v1978_v5  ;;  %2273 = vrot.lane.b32.xlu1 %v2071_v4, %s4391_s9 }
 0xad1   : > { %2271 = vrot.lane.b32.xlu0 %v2070_v6, %s4391_s9  ;;  %3594 = vmatprep.mubr.msk.f32.mxu0 %vm1183_vm2, %v2070_v6 }
 0xb35   : > { %v1887_v10 = vpop.permute.xlu0 %1886 }
 0xb36   : > { %v1892_v11 = vsel %vm1891_vm7, %v1890_v9, %v1887_v10 }
 0xb37   : > { %3590 = vmatmul.mubr.msk.f32.vlgmr.msra.gmra.mxu1 %vm924_vm1, %v1892_v11  ;;  %1893 = vst.msk [vmem:[%s5017_s26] sm:$0xff] %vm924_vm1, %v1892_v11 }
 0xb41   : > { %v2274_v17 = vpop.permute.xlu1 %2273 }
 0xb43   : > { %v2272_v58 = vpop.permute.xlu0 %2271 }
 0xbf7   : > { %v2066_v13 = vpop.f32.mrf.mxu1 }
 0xbf8   : > { %v5021_v14 = vadd.f32 %v3363_v12, %v2066_v13 }
 0xbf9   : > { %v3591_v15 = vpop.f32.mrf.mxu1 }
 0xbfa   : > { %3592 = vmatprep.subr.msk.mxu0 %vm1183_vm2, %v5021_v14  ;;  %2275 = vrot.lane.b32.xlu1 %v5021_v14, %s4391_s9 }
 0xbfb   : > { %2470 = vrot.lane.b32.xlu0 %v5021_v14, %s4393_s18  ;;  %3593 = vmatpush3.xpose.msk.msra.mxu0 %vm1183_vm2, %v5021_v14 }
 0xbfe   : > { %2466 = vrot.lane.b32.xlu1 %v2070_v6, %s4393_s18  ;;  %3595 = vmatmul.mubr.msk.f32.vlgmr.msra.gmra.mxu0 %vm1183_vm2, %v2071_v4 }
 0xbff   : > { %2468 = vrot.lane.b32.xlu0 %v2071_v4, %s4393_s18  ;;  %3604 = vmatprep.mubr.msk.f32.mxu0 %vm1183_vm2, %v2272_v58  ;;  %s4255_s18 = scalar_lea.vmem %s4254_s27, 256 }
 0xc00   : > { %p4257_p1 = scmp.lt.s32.totalorder %s4255_s18, %s4249_s16 }
 0xc02   : > { %2665 = vrot.lane.b32.xlu1 %v5021_v14, %s4394_s13  ;;  %p4258_p2 = por %p4257_p1, %p4256_p0 }
 0xc03   : > { %2661 = vrot.lane.b32.xlu0 %v2070_v6, %s4394_s13 }
 0xc04   : > { %p4259_p3 = pnand %p4258_p2, %p4252_p9 }
 0xc06   : > { %2663 = vrot.lane.b32.xlu1 %v2071_v4, %s4394_s13 }
 0xc6c   : > { %v2276_v18 = vpop.permute.xlu1 %2275 }
 0xc6d   : > { %v2471_v19 = vpop.permute.xlu0 %2470  ;;  %3602 = vmatprep.subr.msk.mxu0 %vm1183_vm2, %v2276_v18 }
 0xc6e   : > { %3603 = vmatpush3.xpose.msk.msra.mxu0 %vm1183_vm2, %v2276_v18 }
 0xc6f   : > { %3612 = vmatprep.subr.msk.mxu0 %vm1183_vm2, %v2471_v19 }
 0xc70   : > { %v2467_v22 = vpop.permute.xlu1 %2466 }
 0xc71   : > { %v2469_v23 = vpop.permute.xlu0 %2468  ;;  %3605 = vmatmul.mubr.msk.f32.vlgmr.msra.gmra.mxu0 %vm1183_vm2, %v2274_v17 }
 0xc72   : > { %3613 = vmatpush3.xpose.msk.msra.mxu0 %vm1183_vm2, %v2471_v19  ;;  %3614 = vmatprep.mubr.msk.f32.mxu0 %vm1183_vm2, %v2467_v22 }
 0xc74   : > { %v2666_v24 = vpop.permute.xlu1 %2665 }
 0xc75   : > { %v2662_v25 = vpop.permute.xlu0 %2661  ;;  %3615 = vmatmul.mubr.msk.f32.vlgmr.msra.gmra.mxu0 %vm1183_vm2, %v2469_v23  ;;  %3622 = vmatprep.subr.msk.mxu0 %vm1183_vm2, %v2666_v24 }
 0xc76   : > { %3623 = vmatpush3.xpose.msk.msra.mxu0 %vm1183_vm2, %v2666_v24  ;;  %3624 = vmatprep.mubr.msk.f32.mxu0 %vm1183_vm2, %v2662_v25 }
 0xc78   : > { %v2664_v26 = vpop.permute.xlu1 %2663 }
 0xc79   : > { %3625 = vmatmul.mubr.msk.f32.vlgmr.msra.gmra.mxu0 %vm1183_vm2, %v2664_v26 }
 0xcbe   : > { %v3596_v27 = vpop.f32.mrf.mxu0 }
 0xcbf   : > { %v2164_v29 = vsel %vm2162_vm8, -10000.0, %v3596_v27 }
 0xcc0   : > { %v2147_v16 = vpop.f32.mrf.mxu0  ;;  %v2168_v20 = vsel %vm1183_vm2, %v2164_v29, -inf }
 0xcc1   : > { %v2163_v21 = vsel %vm2162_vm8, -10000.0, %v2147_v16  ;;  %2169 = vmax.xlane.f32.xlu1 %v2168_v20 }
 0xcc2   : > { %v2165_v30 = vsel %vm1183_vm2, %v2163_v21, -inf }
 0xcc3   : > { %2166 = vmax.xlane.f32.xlu0 %v2165_v30 }
 0xd31   : > { %v3606_v31 = vpop.f32.mrf.mxu0 }
 0xd32   : > { %v2359_v36 = vsel %vm2162_vm8, -10000.0, %v3606_v31 }
 0xd33   : > { %v2349_v32 = vpop.f32.mrf.mxu0  ;;  %v2363_v42 = vsel %vm1183_vm2, %v2359_v36, -inf }
 0xd34   : > { %v2358_v33 = vsel %vm2162_vm8, -10000.0, %v2349_v32 }
 0xd35   : > { %v3616_v34 = vpop.f32.mrf.mxu0  ;;  %v2360_v35 = vsel %vm1183_vm2, %v2358_v33, -inf }
 0xd36   : > { %2361 = vmax.xlane.f32.xlu0 %v2360_v35  ;;  %v2554_v43 = vsel %vm2162_vm8, -10000.0, %v3616_v34 }
 0xd37   : > { %v2544_v38 = vpop.f32.mrf.mxu0  ;;  %v2558_v46 = vsel %vm1183_vm2, %v2554_v43, -inf }
 0xd38   : > { %v2553_v39 = vsel %vm2162_vm8, -10000.0, %v2544_v38 }
 0xd39   : > { %v3626_v40 = vpop.f32.mrf.mxu0  ;;  %v2555_v41 = vsel %vm1183_vm2, %v2553_v39, -inf }
 0xd3a   : > { %2556 = vmax.xlane.f32.xlu1 %v2555_v41  ;;  %2364 = vmax.xlane.f32.xlu0 %v2363_v42  ;;  %v2749_v47 = vsel %vm2162_vm8, -10000.0, %v3626_v40 }
 0xd3b   : > { %v2739_v44 = vpop.f32.mrf.mxu0  ;;  %v2753_v48 = vsel %vm1183_vm2, %v2749_v47, -inf }
 0xd3c   : > { %v5070_v37 = vsel %vm2162_vm8, -10000.0, %v2739_v44 }
 0xd3d   : > { %v2750_v45 = vsel %vm1183_vm2, %v5070_v37, -inf }
 0xd3e   : > { %2751 = vmax.xlane.f32.xlu1 %v2750_v45  ;;  %2559 = vmax.xlane.f32.xlu0 %v2558_v46 }
 0xd42   : > { %2754 = vmax.xlane.f32.xlu0 %v2753_v48 }
 0xd4a   : > { %v2170_v49 = vpop.xlane.xlu1 %2169 }
 0xd4b   : > { %v2172_v50 = vsub.f32 %v2164_v29, %v2170_v49 }
 0xd4c   : > { %v2167_v53 = vpop.xlane.xlu0 %2166 }
 0xd4d   : > { %v2175_v52 = vmul.f32 1.442695, %v2172_v50  ;;  %v2171_v54 = vsub.f32 %v2163_v21, %v2167_v53 }
 0xd4f   : > { %3847 = vpow2.f32 %v2175_v52  ;;  %2187 = vrot.lane.b32.xlu1 %v5021_v14, %s4398_s11  ;;  %v2173_v55 = vmul.f32 1.442695, %v2171_v54 }
 0xd51   : > { %3849 = vpow2.f32 %v2173_v55 }
 0xd5c   : > { %v5079_v51 = vpop.eup %3847 }
 0xd5d   : > { %v2180_v28 = vsel %vm1183_vm2, %v5079_v51, 0.0 }
 0xd5e   : > { %2181 = vadd.xlane.f32.xlu0 %v2180_v28  ;;  %v3850_v56 = vpop.eup %3849  ;;  %v2888_v28 = vld [vmem:[#allocation22 + $0x10] sm:$0xff] }
 0xd5f   : > { %v2177_v57 = vsel %vm1183_vm2, %v3850_v56, 0.0 }
 0xd73   : > { %2178 = vadd.xlane.f32.xlu1 %v2177_v57 }
 0xdbf   : > { %v2362_v59 = vpop.xlane.xlu0 %2361 }
 0xdc0   : > { %v2366_v60 = vsub.f32 %v2358_v33, %v2362_v59 }
 0xdc2   : > { %v2368_v61 = vmul.f32 1.442695, %v2366_v60 }
 0xdc3   : > { %v2557_v62 = vpop.xlane.xlu1 %2556  ;;  %v2365_v63 = vpop.xlane.xlu0 %2364 }
 0xdc4   : > { %3851 = vpow2.f32 %v2368_v61  ;;  %v2561_v1 = vsub.f32 %v2553_v39, %v2557_v62  ;;  %v2367_v2 = vsub.f32 %v2359_v36, %v2365_v63  ;;  %v2887_v61 = vld [vmem:[#allocation22 + $0x8] sm:$0xff]  ;;  %v2886_v62 = vld [vmem:[#allocation22] sm:$0xff] }
 0xdc6   : > { %v2563_v3 = vmul.f32 1.442695, %v2561_v1  ;;  %v2370_v4 = vmul.f32 1.442695, %v2367_v2 }
 0xdc7   : > { %v2752_v5 = vpop.xlane.xlu1 %2751  ;;  %v2560_v6 = vpop.xlane.xlu0 %2559 }
 0xdc8   : > { %3853 = vpow2.f32 %v2563_v3  ;;  %v2562_v0 = vsub.f32 %v2554_v43, %v2560_v6  ;;  %v2756_v25 = vsub.f32 %v5070_v37, %v2752_v5 }
 0xdc9   : > { %3855 = vpow2.f32 %v2370_v4 }
 0xdca   : > { %v2565_v7 = vmul.f32 1.442695, %v2562_v0  ;;  %v2758_v26 = vmul.f32 1.442695, %v2756_v25 }
 0xdcb   : > { %v2188_v8 = vpop.permute.xlu1 %2187  ;;  %v2755_v9 = vpop.xlane.xlu0 %2754 }
 0xdcc   : > { %v2757_v10 = vsub.f32 %v2749_v47, %v2755_v9  ;;  %3597 = vmatprep.subr.mxu1 %v2188_v8  ;;  %3857 = vpow2.f32 %v2565_v7 }
 0xdcd   : > { %3598 = vmatpush3.msra.mxu1 %v2188_v8 }
 0xdce   : > { %v2760_v11 = vmul.f32 1.442695, %v2757_v10 }
 0xdd0   : > { %3859 = vpow2.f32 %v2760_v11 }
 0xdd1   : > { %v3852_v12 = vpop.eup %3851  ;;  %3861 = vpow2.f32 %v2758_v26 }
 0xdd2   : > { %v2372_v13 = vsel %vm1183_vm2, %v3852_v12, 0.0 }
 0xdd3   : > { %2373 = vadd.xlane.f32.xlu1 %v2372_v13 }
 0xdd5   : > { %v3854_v15 = vpop.eup %3853 }
 0xdd6   : > { %v3856_v58 = vpop.eup %3855  ;;  %v2567_v17 = vsel %vm1183_vm2, %v3854_v15, 0.0 }
 0xdd7   : > { %2568 = vadd.xlane.f32.xlu1 %v2567_v17  ;;  %v2375_v18 = vsel %vm1183_vm2, %v3856_v58, 0.0 }
 0xdd8   : > { %2376 = vadd.xlane.f32.xlu0 %v2375_v18 }
 0xdd9   : > { %v3858_v19 = vpop.eup %3857 }
 0xdda   : > { %v2570_v22 = vsel %vm1183_vm2, %v3858_v19, 0.0 }
 0xddc   : > { %2571 = vadd.xlane.f32.xlu0 %v2570_v22 }
 0xddd   : > { %v3860_v23 = vpop.eup %3859 }
 0xdde   : > { %v2765_v24 = vsel %vm1183_vm2, %v3860_v23, 0.0  ;;  %v3862_v16 = vpop.eup %3861 }
 0xddf   : > { %v2762_v30 = vsel %vm1183_vm2, %v3862_v16, 0.0 }
 0xde0   : > { %2766 = vadd.xlane.f32.xlu0 %v2765_v24 }
 0xde7   : > { %v2182_v27 = vpop.xlane.xlu0 %2181 }
 0xde8   : > { %2577 = vrot.lane.b32.xlu1 %v5021_v14, %s4399_s28  ;;  %3863 = vrcp.f32 %v2182_v27 }
 0xdf5   : > { %v3864_v20 = vpop.eup %3863 }
 0xdf6   : > { %2382 = vrot.lane.b32.xlu0 %v5021_v14, %s4400_s6  ;;  %v2186_v32 = vmul.f32 %v3864_v20, %v5079_v51  ;;  %v2889_v51 = vld [vmem:[#allocation22 + $0x18] sm:$0xff] }
 0xdf7   : > { %3632 = vmatprep.subr.mxu0 %v2889_v51 }
 0xdf8   : > { %3633 = vmatpush3.msra.mxu0 %v2889_v51 }
 0xdf9   : > { %3634 = vmatprep.subr.mxu0 %v2888_v28 }
 0xdfa   : > { %3635 = vmatpush3.msra.mxu0 %v2888_v28 }
 0xdfb   : > { %3636 = vmatprep.subr.mxu0 %v2887_v61 }
 0xdfc   : > { %v2179_v29 = vpop.xlane.xlu1 %2178  ;;  %3637 = vmatpush3.msra.mxu0 %v2887_v61 }
 0xdfd   : > { %3865 = vrcp.f32 %v2179_v29  ;;  %3638 = vmatprep.subr.mxu0 %v2886_v62 }
 0xdfe   : > { %3639 = vmatpush3.msra.mxu0 %v2886_v62 }
 0xe0a   : > { %v3866_v21 = vpop.eup %3865 }
 0xe0b   : > { %v2185_v31 = vmul.f32 %v3866_v21, %v3850_v56 }
 0xe0c   : > { %2763 = vadd.xlane.f32.xlu1 %v2762_v30 }
 0xe0d   : > { %3599 = vmatprep.mubr.msk.f32.mxu1 %vm1183_vm2, %v2185_v31 }
 0xe0e   : > { %3600 = vmatmul.mubr.msk.f32.vlgmr.msra.gmra.mxu1 %vm1183_vm2, %v2186_v32 }
 0xe1d   : > { %2772 = vrot.lane.b32.xlu1 %v5021_v14, %s4401_s24 }
 0xe5c   : > { %v2374_v33 = vpop.xlane.xlu1 %2373 }
 0xe5d   : > { %3867 = vrcp.f32 %v2374_v33 }
 0xe60   : > { %v2569_v34 = vpop.xlane.xlu1 %2568 }
 0xe61   : > { %3869 = vrcp.f32 %v2569_v34  ;;  %v2377_v35 = vpop.xlane.xlu0 %2376 }
 0xe62   : > { %3871 = vrcp.f32 %v2377_v35 }
 0xe64   : > { %v2578_v44 = vpop.permute.xlu1 %2577 }
 0xe65   : > { %v2572_v36 = vpop.xlane.xlu0 %2571 }
 0xe66   : > { %3873 = vrcp.f32 %v2572_v36 }
 0xe69   : > { %v2767_v38 = vpop.xlane.xlu0 %2766 }
 0xe6a   : > { %v3868_v39 = vpop.eup %3867  ;;  %3875 = vrcp.f32 %v2767_v38 }
 0xe6b   : > { %v2380_v40 = vmul.f32 %v3868_v39, %v3852_v12 }
 0xe6d   : > { %v2383_v41 = vpop.permute.xlu0 %2382  ;;  %3609 = vmatprep.mubr.msk.f32.mxu1 %vm1183_vm2, %v2380_v40 }
 0xe6e   : > { %v3870_v42 = vpop.eup %3869  ;;  %3607 = vmatprep.subr.mxu1 %v2383_v41 }
 0xe6f   : > { %v3872_v43 = vpop.eup %3871  ;;  %3608 = vmatpush3.msra.mxu1 %v2383_v41  ;;  %v2575_v14 = vmul.f32 %v3870_v42, %v3854_v15 }
 0xe70   : > { %3617 = vmatprep.subr.mxu1 %v2578_v44  ;;  %v2381_v37 = vmul.f32 %v3872_v43, %v3856_v58 }
 0xe72   : > { %3610 = vmatmul.mubr.msk.f32.vlgmr.msra.gmra.mxu1 %vm1183_vm2, %v2381_v37 }
 0xe73   : > { %v3874_v45 = vpop.eup %3873  ;;  %3618 = vmatpush3.msra.mxu1 %v2578_v44  ;;  %3619 = vmatprep.mubr.msk.f32.mxu1 %vm1183_vm2, %v2575_v14 }
 0xe74   : > { %v2576_v46 = vmul.f32 %v3874_v45, %v3858_v19 }
 0xe76   : > { %3620 = vmatmul.mubr.msk.f32.vlgmr.msra.gmra.mxu1 %vm1183_vm2, %v2576_v46 }
 0xe77   : > { %v3876_v49 = vpop.eup %3875 }
 0xe78   : > { %v2771_v53 = vmul.f32 %v3876_v49, %v3860_v23 }
 0xe95   : > { %v2764_v47 = vpop.xlane.xlu1 %2763 }
 0xe96   : > { %3877 = vrcp.f32 %v2764_v47 }
 0xe99   : > { %v2773_v48 = vpop.permute.xlu1 %2772 }
 0xe9a   : > { %3627 = vmatprep.subr.mxu1 %v2773_v48 }
 0xe9b   : > { %3628 = vmatpush3.msra.mxu1 %v2773_v48 }
 0xea3   : > { %v3878_v50 = vpop.eup %3877 }
 0xea4   : > { %v2770_v52 = vmul.f32 %v3878_v50, %v3862_v16 }
 0xea6   : > { %3629 = vmatprep.mubr.msk.f32.mxu1 %vm1183_vm2, %v2770_v52 }
 0xea7   : > { %3630 = vmatmul.mubr.msk.f32.vlgmr.msra.gmra.mxu1 %vm1183_vm2, %v2771_v53 }
 0xece   : > { %v3601_v54 = vpop.f32.mrf.mxu1 }
 0xed0   : > { %v2262_v55 = vpop.f32.mrf.mxu1 }
 0xf32   : > { %v3611_v56 = vpop.f32.mrf.mxu1 }
 0xf33   : > { %2860 = vrot.lane.b32.xlu1 %v3611_v56, %s4395_s29 }
 0xf34   : > { %v2457_v57 = vpop.f32.mrf.mxu1 }
 0xf35   : > { %2858 = vrot.lane.b32.xlu0 %v2457_v57, %s4395_s29 }
 0xf36   : > { %v3621_v59 = vpop.f32.mrf.mxu1 }
 0xf37   : > { %2868 = vrot.lane.b32.xlu1 %v3621_v59, %s4396_s1 }
 0xf38   : > { %v2652_v60 = vpop.f32.mrf.mxu1 }
 0xf39   : > { %2866 = vrot.lane.b32.xlu0 %v2652_v60, %s4396_s1 }
 0xf67   : > { %v3631_v63 = vpop.f32.mrf.mxu1 }
 0xf68   : > { %2876 = vrot.lane.b32.xlu1 %v3631_v63, %s4397_s15 }
 0xf69   : > { %v2847_v1 = vpop.f32.mrf.mxu1 }
 0xf6a   : > { %2874 = vrot.lane.b32.xlu0 %v2847_v1, %s4397_s15 }
 0xfa5   : > { %v2861_v2 = vpop.permute.xlu1 %2860 }
 0xfa6   : > { %v2881_v7 = vsel %vm1183_vm2, %v3601_v54, %v2861_v2 }
 0xfa7   : > { %v2859_v3 = vpop.permute.xlu0 %2858 }
 0xfa8   : > { %v2880_v6 = vsel %vm1183_vm2, %v2262_v55, %v2859_v3 }
 0xfa9   : > { %v2869_v4 = vpop.permute.xlu1 %2868 }
 0xfaa   : > { %v2883_v10 = vsel %vm1271_vm6, %v2881_v7, %v2869_v4 }
 0xfab   : > { %v2867_v5 = vpop.permute.xlu0 %2866 }
 0xfac   : > { %v2882_v8 = vsel %vm1271_vm6, %v2880_v6, %v2867_v5 }
 0xfda   : > { %v2877_v0 = vpop.permute.xlu1 %2876 }
 0xfdb   : > { %v2885_v12 = vsel %vm1891_vm7, %v2883_v10, %v2877_v0 }
 0xfdc   : > { %v2875_v9 = vpop.permute.xlu0 %2874 }
 0xfdd   : > { %v2884_v11 = vsel %vm1891_vm7, %v2882_v8, %v2875_v9 }
 0xfde   : > { %3640 = vmatprep.mubr.msk.f32.mxu0 %vm924_vm1, %v2884_v11 }
 0xfdf   : > { %3641 = vmatmul.mubr.msk.f32.vlgmr.msra.gmra.mxu0 %vm924_vm1, %v2885_v12 }
 0xfe0   : > { %4262 = shalt.err (!%p4259_p3)
}
 0xfe1   : > { %s4263_s13 = scalar_lea.hbm %s2997_s5, 128  ;;  %s4267_s26 = scalar_lea.hbm %s5301_s8, 256 }
 0xfe2   : > { %p4264_p6 = scmp.ne.s32.totalorder %s2997_s5, %s4263_s13  ;;  %p4268_p7 = scmp.lt.s32.totalorder %s2997_s5, %s5301_s8 }
 0xfe3   : > { %p4269_p11 = scmp.lt.s32.totalorder %s4267_s26, %s4263_s13 }
 0xfe4   : > { %p4265_p10 = pnand %p4264_p6, %p5302_p4 }
 0xfe5   : > { %p4270_p5 = por %p4269_p11, %p4268_p7 }
 0xfe6   : > { %p4266_p12 = pneg %p4265_p10 }
 0xfe8   : > { %p4271_p13 = pnand %p4270_p5, %p4266_p12 }
 0xfea   : > { %4274 = shalt.err (!%p4271_p13)
}
 0xfeb   : > { %3693 = dma.vmem_to_hbm [thread:$0]  (%p5302_p4), %s3000_s22, 128, %s2997_s5, %s2981_s25   ;;  %v3385_v13 = vld [vmem:[#allocation23] ss:$0 sm:$0xff] }
 0xfec   : > { %s892_s6 = scalar_lea.vmem [#allocation26], %s4798_s14  ;;  %s3398_s19 = sshll.u32 %s4526_s2, 8 }
 0xfed   : > { %s3012_s24 = sshll.u32 %s892_s6, 4  ;;  %s5303_s20 = sld [smem:[#allocation59_spill]]  ;;  %s5137_s24 = int_to_ptr.vmem [resolvable:$true] %s3012_s24 }
 0xfee   : > { %s2986_s14 = scalar_lea.sflag [#allocation27], %s4795_s12  ;;  %s4275_s22 = scalar_lea.vmem %s5137_s24, 256 }
 0xfef   : > { %p4276_p8 = scmp.ne.s32.totalorder %s5137_s24, %s4275_s22  ;;  %s4403_s2 = smov [#allocation26]  }
 0xff0   : > { %s4279_s25 = sshll.u32 %s4403_s2, 4  ;;  %s4280_s25 = int_to_ptr.vmem [resolvable:$false] %s4279_s25 }
 0xff1   : > { %p4277_p9 = pnand %p4276_p8, %p5302_p4  ;;  %s4281_s23 = scalar_lea.vmem %s4280_s25, 512 }
 0xff2   : > { %p4282_p1 = scmp.lt.s32.totalorder %s5137_s24, %s4280_s25  ;;  %p4283_p2 = scmp.lt.s32.totalorder %s4281_s23, %s4275_s22 }
 0xff3   : > { %s5304_s16 = smov %s5303_s20  ;;  %s5143_s5 = scalar_lea.hbm %s5303_s20, %s3398_s19 }
 0xff4   : > { %p4278_p0 = pneg %p4277_p9  ;;  %p4284_p3 = por %p4283_p2, %p4282_p1 }
 0xff6   : > { %p4285_p6 = pnand %p4284_p3, %p4278_p0 }
0x109f   : > { %v3642_v15 = vpop.f32.mrf.mxu0 }
0x10a0   : > { %v2975_v58 = vadd.f32 %v3642_v15, %v3385_v13 }
0x10a1   : > { %v2969_v17 = vpop.f32.mrf.mxu0 }
0x10a2   : > { %2979 = vst.msk [vmem:[%s892_s6 + $0x8] sm:$0xff] %vm924_vm1, %v2975_v58  ;;  %v2970_v18 = vadd.f32 %v3385_v13, %v2969_v17 }
0x10a4   : > { %2978 = vst.msk [vmem:[%s892_s6] sm:$0xff] %vm924_vm1, %v2970_v18 }
0x10a5   : > { %4288 = shalt.err (!%p4285_p6)
}
0x10a6   : > { %s4289_s27 = scalar_lea.hbm %s5143_s5, 256  ;;  %s4293_s1 = scalar_lea.hbm %s5304_s16, 512 }
0x10a7   : > { %p4290_p10 = scmp.ne.s32.totalorder %s5143_s5, %s4289_s27  ;;  %p4294_p11 = scmp.lt.s32.totalorder %s5143_s5, %s5304_s16 }
0x10a8   : > { %p4295_p5 = scmp.lt.s32.totalorder %s4293_s1, %s4289_s27 }
0x10a9   : > { %p4291_p12 = pnand %p4290_p10, %p5302_p4 }
0x10aa   : > { %p4296_p13 = por %p4295_p5, %p4294_p11 }
0x10ab   : > { %p4292_p7 = pneg %p4291_p12 }
0x10ad   : > { %p4297_p8 = pnand %p4296_p13, %p4292_p7 }
0x10af   : > { %4300 = shalt.err (!%p4297_p8)
}
0x10b0   : > { %s4404_s11 = smov 128  }
0x10b1   : > { %3694 = dma.vmem_to_hbm [thread:$0]  (%p5302_p4), %s5137_s24, 256, %s5143_s5, %s2986_s14, %s4404_s11, %s4404_s11, %s4395_s29  }
0x10b2 PF: > { %s5305_s28 = sld [smem:[#allocation41_spill]]  ;;  %s3027_s6 = sand.u32 1, %s4359_s0  }
0x10b3   : > { %p5307_p0 = scmp.ge.s32.totalorder %s4371_s21, 2  ;;  %s3028_s19 = scalar_lea.sflag [#allocation4], %s3027_s6 }
0x10b8   : > { %p5306_p9 = scmp.ne.s32.totalorder %s5305_s28, 0 }
0x10ba   : > { %p3742_p1 = pnand %p5307_p0, %p5306_p9 }
0x10bc   : > { %p3743_p2 = pneg %p3742_p1 }
0x10be   : > { %4350 = dma.done.wait (%p3743_p2), %s3028_s19, 128  }
0x10bf   : > { %4352 = vsyncadd (%p3743_p2), %s3028_s19, 4294967168  ;;  %s3037_s10 = scalar_lea.sflag [#allocation27], %s3027_s6 }
0x10c0   : > { %4354 = dma.done.wait (%p3743_p2), %s3037_s10, 256  }
0x10c1   : > { %4356 = vsyncadd (%p3743_p2), %s3037_s10, 4294967040  ;;  %s5308_s21 = sld [smem:[#allocation39_spill]]  ;;  %s5311_s0 = smov %s4363_s30 }
0x10c2   : > { %s5309_s4 = sld [smem:[#allocation38_spill]] }
0x10c3   : > { %s5310_s20 = sld [smem:[#allocation40_spill]] }
0x10c7   : > { %p45_p4 = scmp.ge.s32.totalorder %s5308_s21, 4  }
0x10c8   : > { %s5312_s30 = smov %s5309_s4 }
0x10c9   :  { %47 = sbr.rel (!%p45_p4) target bundleno = 34 (0x22), region = 231 }
0x10ce   :  { %3042 = vsyncpa [#allocation3], 1 }
0x10cf   :  { %3044 = vsyncpa [#allocation3 + $0x1], 1 }
0x10d0   :  { %3045 = vsyncpa [#allocation6], 1 }
0x10d1   :  { %3047 = vsyncpa [#allocation6 + $0x1], 1 }
0x10d2   :  { %3048 = vsyncpa [#allocation9], 1 }
0x10d3   :  { %3049 = vsyncpa [#allocation12], 1 }
0x10d4   :  { %3050 = vsyncpa [#allocation15], 1 }
0x10d5   :  { %3051 = vsyncpa [#allocation18], 1 }
0x10d6   :  { %3052 = vsyncpa [#allocation21], 1 }
0x10d7   :  { %3053 = vsyncpa [#allocation24], 1 }
0x10d8   :  { %3054 = vsyncpa [#allocation4], 1 }
0x10d9   :  { %3056 = vsyncpa [#allocation4 + $0x1], 1 }
0x10da   :  { %3057 = vsyncpa [#allocation27], 1 }
0x10db   :  { %3059 = vsyncpa [#allocation27 + $0x1], 1 }

</bundles_post_ra>
